<compile_context>
chip_gen: v5e
topology: v5e:2x2
jax: 0.10.0
libtpu: 0.0.40
codegen_flags: <defaults>
</compile_context>

<pallas_src>
import jax
import jax.numpy as jnp
from jax.experimental import pallas as pl
from jax.experimental.pallas import tpu as pltpu

_INNER_MLP_MULT = 2
_BN_EPS = 1e-5
_ROW_PAD = 16      # sublane padding; valid for f32 (8) and bf16 (16) tiles
_LANE_PAD = 128    # lane-dense padding for MLP mid / output channel dims


def _round_up(n, m):
    return ((n + m - 1) // m) * m


def _full_spec(shape):
    """Whole-array block for the single-point grid."""
    return pl.BlockSpec(shape, lambda *_: (0,) * len(shape))


def _pad2d(a, rows, cols):
    return jnp.pad(a, ((0, rows - a.shape[0]), (0, cols - a.shape[1])))


# ---------------------------------------------------------------------------
# Fused Edge_Cycle forward kernel (single pallas_call)
# ---------------------------------------------------------------------------
def _make_fused_kernel(num_cycles, re_real, rc_reals, d):
    """Builds the fused kernel; all shapes / row counts are static per graph.

    Channel bookkeeping (D = hidden_dim):
      e2c        = [A_id1@e | A_sum1@e]                                   (2D)
      cyc        = [A_id2@e2c | A_sum2@e2c]                               (4D)
      cycle_new  = [cyc | cycle_rep]                                      (5D)
      cycle2edge = sum_i [A_ide_i@cycle_new_i ; A_sume_i@cycle_new_i]     (rows)
      edge_in    = [edge_rep | id-part(5D) | sum-part(5D)]                (11D)
    Wide tensors are built by lane concatenation so each MLP first layer is a
    single big-K matmul against the full (row-ordered) weight matrix.
    """

    def _row_mask(n_pad, n_real):
        if n_real >= n_pad:
            return None
        return (jax.lax.broadcasted_iota(jnp.int32, (n_pad, 1), 0)
                < n_real).astype(jnp.float32)

    def _bn_relu(x, n_real, gamma, beta, mask):
        # BatchNorm1d training mode: batch stats, biased variance, eps=1e-5.
        # Padded rows of `x` are exactly zero; the mask keeps them out of the
        # (centered, two-pass) variance and re-zeros them afterwards.
        inv_n = 1.0 / float(n_real)
        mean = jnp.sum(x, axis=0, keepdims=True) * inv_n
        xc = x - mean
        if mask is not None:
            xc = xc * mask
        var = jnp.sum(xc * xc, axis=0, keepdims=True) * inv_n
        y = jnp.maximum(xc * jax.lax.rsqrt(var + _BN_EPS) * gamma + beta, 0.0)
        if mask is not None:
            y = y * mask
        return y

    def _mlp(x, w1, g1, b1, w2, g2, b2, n_real, mask):
        # Linear(K -> 128, bias=False) as one big-K dot, BN+ReLU, Linear, BN+ReLU.
        h1 = jnp.dot(x, w1[...], preferred_element_type=jnp.float32)
        h1 = _bn_relu(h1, n_real, g1[...], b1[...], mask)
        h2 = jnp.dot(h1, w2[...], preferred_element_type=jnp.float32)
        return _bn_relu(h2, n_real, g2[...], b2[...], mask)

    def kernel(*refs):
        it = iter(refs)
        edge_rep_ref = next(it)
        ge2c_refs, gc2c_refs, gc2e_refs, crep_refs = [], [], [], []
        for _ in range(num_cycles):
            ge2c_refs.append(next(it))
            gc2c_refs.append(next(it))
            gc2e_refs.append(next(it))
            crep_refs.append(next(it))
        w1e, g1e, b1e, w2e, g2e, b2e = [next(it) for _ in range(6)]
        w1c, g1c, b1c, w2c, g2c, b2c = [next(it) for _ in range(6)]
        edge_out_ref = next(it)
        cycle_out_refs = [next(it) for _ in range(num_cycles)]

        re_pad = edge_rep_ref.shape[0]
        edge_rep = edge_rep_ref[...]                              # [re_pad, D]
        edge_mask = _row_mask(re_pad, re_real)

        # cycles2edge accumulator: rows [:re_pad] = id-gather part,
        # rows [re_pad:] = sum-gather part; 5*D lanes (lane-dense, f32).
        z_acc = jnp.zeros((2 * re_pad, 5 * d), jnp.float32)

        for i in range(num_cycles):
            rc_pad = crep_refs[i].shape[0]

            # --- edge -> cycle gather, stage 1 (id/sum row-stacked) ---------
            s1 = jnp.dot(ge2c_refs[i][...], edge_rep,
                         preferred_element_type=jnp.float32)      # [2rc, D]
            e2c = jnp.concatenate([s1[:rc_pad], s1[rc_pad:]], axis=-1)  # [rc, 2D]

            # --- cycle -> cycle gather, stage 2 ------------------------------
            s2 = jnp.dot(gc2c_refs[i][...], e2c,
                         preferred_element_type=jnp.float32)      # [2rc, 2D]
            cyc = jnp.concatenate([s2[:rc_pad], s2[rc_pad:]], axis=-1)  # [rc, 4D]

            # cat_channels with the resident cycle representation (lane concat)
            cycle_new = jnp.concatenate([cyc, crep_refs[i][...]], axis=-1)  # [rc, 5D]

            # --- cycle -> edge gather: ONE dot per cycle, in-register accum --
            z_acc = z_acc + jnp.dot(gc2e_refs[i][...], cycle_new,
                                    preferred_element_type=jnp.float32)  # [2re, 5D]

            # --- cycle MLP interleaved (keeps live set small) ----------------
            cmask = _row_mask(rc_pad, rc_reals[i])
            cycle_out_refs[i][...] = _mlp(cycle_new, w1c, g1c, b1c,
                                          w2c, g2c, b2c, rc_reals[i], cmask)

        # --- edge MLP: lane-concat -> single big-K (11D) dot ----------------
        edge_in = jnp.concatenate(
            [edge_rep, z_acc[:re_pad], z_acc[re_pad:]], axis=-1)  # [re, 11D]
        edge_out_ref[...] = _mlp(edge_in, w1e, g1e, b1e,
                                 w2e, g2e, b2e, re_real, edge_mask)

    return kernel


# ---------------------------------------------------------------------------
# Wrapper: static per-graph preprocessing + one pallas_call
# ---------------------------------------------------------------------------
def edge_cycle_forward(edge_rep, cycle_reps, gathers, edge_mlp_p, cycle_mlp_p):
    """Fused Edge_Cycle forward.

    gathers[i]: dict with incidence-matrix pairs 'e2c' [rc, re], 'c2c' [rc, rc],
    'c2e' [re, rc]; each entry = (A_id, A_sum) — dense stand-ins for the
    graph-dependent ptens gather maps.
    """
    re_real, d = edge_rep.shape
    num_cycles = len(cycle_reps)
    rc_reals = [c.shape[0] for c in cycle_reps]
    re_pad = _round_up(re_real, _ROW_PAD)
    rc_pads = [_round_up(rc, _ROW_PAD) for rc in rc_reals]

    edge_rep_p = _pad2d(edge_rep.astype(jnp.float32), re_pad, d)

    per_cycle = []
    for crep, g, rc_pad in zip(cycle_reps, gathers, rc_pads):
        a_id1, a_sum1 = [_pad2d(a.astype(jnp.float32), rc_pad, re_pad)
                         for a in g["e2c"]]
        a_id2, a_sum2 = [_pad2d(a.astype(jnp.float32), rc_pad, rc_pad)
                         for a in g["c2c"]]
        a_ide, a_sume = [_pad2d(a.astype(jnp.float32), re_pad, rc_pad)
                         for a in g["c2e"]]
        ge2c = jnp.concatenate([a_id1, a_sum1], axis=0)   # [2rc_pad, re_pad]
        gc2c = jnp.concatenate([a_id2, a_sum2], axis=0)   # [2rc_pad, rc_pad]
        gc2e = jnp.concatenate([a_ide, a_sume], axis=0)   # [2re_pad, rc_pad]
        per_cycle += [ge2c, gc2c, gc2e,
                      _pad2d(crep.astype(jnp.float32), rc_pad, d)]

    mid = edge_mlp_p[0].shape[1]          # 2D
    out_d = edge_mlp_p[3].shape[1]        # D
    mid_pad = _round_up(mid, _LANE_PAD)   # 128
    out_pad = _round_up(out_d, _LANE_PAD)  # 128

    def pad_mlp(p):
        # Zero-pad the mid and output channel dims to 128 lanes: padded columns
        # carry zero weights and zero gamma/beta, so they stay exactly zero
        # through BN+ReLU and contribute nothing downstream; stores become
        # full-lane vst instead of masked partial stores.
        w1, g1, b1, w2, g2, b2 = p
        return [_pad2d(w1.astype(jnp.float32), w1.shape[0], mid_pad),
                _pad2d(g1.astype(jnp.float32), 1, mid_pad),
                _pad2d(b1.astype(jnp.float32), 1, mid_pad),
                _pad2d(w2.astype(jnp.float32), mid_pad, out_pad),
                _pad2d(g2.astype(jnp.float32), 1, out_pad),
                _pad2d(b2.astype(jnp.float32), 1, out_pad)]

    inputs = [edge_rep_p] + per_cycle + pad_mlp(edge_mlp_p) + pad_mlp(cycle_mlp_p)

    out_shape = tuple(
        [jax.ShapeDtypeStruct((re_pad, out_pad), jnp.float32)]
        + [jax.ShapeDtypeStruct((rc_pad, out_pad), jnp.float32)
           for rc_pad in rc_pads])

    kernel = _make_fused_kernel(num_cycles, re_real, rc_reals, d)
    outs = pl.pallas_call(
        kernel,
        grid=(1,),     # whole working set (<1 MiB) fits VMEM on v5e/v6e/v7x
        in_specs=[_full_spec(x.shape) for x in inputs],
        out_specs=tuple(_full_spec(s.shape) for s in out_shape),
        out_shape=out_shape,
        compiler_params=pltpu.CompilerParams(
            # TODO(synk): for multi-graph / row-tiled production grids mark the
            # graph/row axis "parallel" (v7x has 2 TensorCores).
            dimension_semantics=("arbitrary",),
            vmem_limit_bytes=32 * 1024 * 1024),
    )(*inputs)

    edge_out = outs[0][:re_real, :out_d]
    cycle_outs = [o[:rc, :out_d] for o, rc in zip(outs[1:], rc_reals)]
    return edge_out, cycle_outs


# ---------------------------------------------------------------------------
# Pure-JAX f32 reference (original, unfused two-stage structure)
# ---------------------------------------------------------------------------
def edge_cycle_forward_ref(edge_rep, cycle_reps, gathers, edge_mlp_p, cycle_mlp_p):
    def gather(pair, x):
        a_id, a_sum = pair
        return jnp.concatenate([a_id @ x, a_sum @ x], axis=-1)

    def mlp(x, params):
        w1, g1, b1, w2, g2, b2 = params

        def block(h, g, b):
            mean = jnp.mean(h, axis=0, keepdims=True)
            var = jnp.mean((h - mean) ** 2, axis=0, keepdims=True)
            return jnp.maximum(
                (h - mean) * jax.lax.rsqrt(var + _BN_EPS) * g + b, 0.0)

        return block(block(x @ w1, g1, b1) @ w2, g2, b2)

    cycle_news, cycles2edge = [], []
    for crep, g in zip(cycle_reps, gathers):
        e2c = gather(g["e2c"], edge_rep)
        e2c = gather(g["c2c"], e2c)
        cycle_new = jnp.concatenate([e2c, crep], axis=-1)
        cycle_news.append(cycle_new)
        cycles2edge.append(gather(g["c2e"], cycle_new))
    cycle2edge = sum(cycles2edge[1:], cycles2edge[0])
    edge_out = mlp(jnp.concatenate([edge_rep, cycle2edge], -1), edge_mlp_p)
    cycle_outs = [mlp(cn, cycle_mlp_p) for cn in cycle_news]
    return edge_out, cycle_outs


# ---------------------------------------------------------------------------
# Deterministic parameter / input construction
# ---------------------------------------------------------------------------
def make_mlp_params(key, in_dim, hidden_dim):
    mid = hidden_dim * _INNER_MLP_MULT
    k1, k2 = jax.random.split(key)
    w1 = jax.random.normal(k1, (in_dim, mid), jnp.float32) / jnp.sqrt(in_dim)
    w2 = jax.random.normal(k2, (mid, hidden_dim), jnp.float32) / jnp.sqrt(mid)
    g1 = jnp.ones((1, mid), jnp.float32)
    b1 = jnp.zeros((1, mid), jnp.float32)
    g2 = jnp.ones((1, hidden_dim), jnp.float32)
    b2 = jnp.zeros((1, hidden_dim), jnp.float32)
    return (w1, g1, b1, w2, g2, b2)


def make_incidence_pair(key, rows_out, rows_in):
    k1, k2 = jax.random.split(key)
    a_id = jax.random.bernoulli(k1, 0.4, (rows_out, rows_in)).astype(jnp.float32)
    a_sum = jax.random.bernoulli(k2, 0.4, (rows_out, rows_in)).astype(jnp.float32)
    return a_id, a_sum


if __name__ == "__main__":
    key = jax.random.PRNGKey(0)
    hidden_dim = 32
    n_edge_rows = 16                 # 8 edges x 2 nodes (order-1 edge ptensors)
    cycle_rows = [10, 12]            # 2 five-cycles, 2 six-cycles

    keys = jax.random.split(key, 16)
    edge_rep = jax.random.normal(keys[0], (n_edge_rows, hidden_dim), jnp.float32)
    cycle_reps = [
        jax.random.normal(keys[1], (cycle_rows[0], hidden_dim), jnp.float32),
        jax.random.normal(keys[2], (cycle_rows[1], hidden_dim), jnp.float32),
    ]

    gathers = []
    for i, rc in enumerate(cycle_rows):
        gathers.append({
            "e2c": make_incidence_pair(keys[3 + 3 * i], rc, n_edge_rows),
            "c2c": make_incidence_pair(keys[4 + 3 * i], rc, rc),
            "c2e": make_incidence_pair(keys[5 + 3 * i], n_edge_rows, rc),
        })

    edge_mlp_p = make_mlp_params(keys[10], 11 * hidden_dim, hidden_dim)
    cycle_mlp_p = make_mlp_params(keys[11], 5 * hidden_dim, hidden_dim)

    fwd = jax.jit(edge_cycle_forward)
    edge_out, cycle_outs = fwd(edge_rep, cycle_reps, gathers,
                               edge_mlp_p, cycle_mlp_p)
    edge_out = jax.block_until_ready(edge_out)
    cycle_outs = [jax.block_until_ready(c) for c in cycle_outs]

    assert edge_out.shape == (n_edge_rows, hidden_dim)
    assert cycle_outs[0].shape == (cycle_rows[0], hidden_dim)
    assert cycle_outs[1].shape == (cycle_rows[1], hidden_dim)

    # Correctness vs. the plain-JAX f32 reference of the original (two-stage,
    # unfused) computation; all kernel compute is f32 so tolerance is tight.
    ref_e, ref_c = edge_cycle_forward_ref(edge_rep, cycle_reps, gathers,
                                          edge_mlp_p, cycle_mlp_p)
    assert float(jnp.max(jnp.abs(edge_out - ref_e))) < 5e-2
    for got, want in zip(cycle_outs, ref_c):
        assert float(jnp.max(jnp.abs(got - want))) < 5e-2

    print("KERNEL_OK")
</pallas_src>

<mosaic_0001>
module attributes {stable_mosaic.version = 11 : i64} {
  func.func @kernel(%arg0: i32, %arg1: memref<16x32xf32, #tpu.memory_space<vmem>>, %arg2: memref<32x16xf32, #tpu.memory_space<vmem>>, %arg3: memref<32x16xf32, #tpu.memory_space<vmem>>, %arg4: memref<32x16xf32, #tpu.memory_space<vmem>>, %arg5: memref<16x32xf32, #tpu.memory_space<vmem>>, %arg6: memref<32x16xf32, #tpu.memory_space<vmem>>, %arg7: memref<32x16xf32, #tpu.memory_space<vmem>>, %arg8: memref<32x16xf32, #tpu.memory_space<vmem>>, %arg9: memref<16x32xf32, #tpu.memory_space<vmem>>, %arg10: memref<352x128xf32, #tpu.memory_space<vmem>>, %arg11: memref<1x128xf32, #tpu.memory_space<vmem>>, %arg12: memref<1x128xf32, #tpu.memory_space<vmem>>, %arg13: memref<128x128xf32, #tpu.memory_space<vmem>>, %arg14: memref<1x128xf32, #tpu.memory_space<vmem>>, %arg15: memref<1x128xf32, #tpu.memory_space<vmem>>, %arg16: memref<160x128xf32, #tpu.memory_space<vmem>>, %arg17: memref<1x128xf32, #tpu.memory_space<vmem>>, %arg18: memref<1x128xf32, #tpu.memory_space<vmem>>, %arg19: memref<128x128xf32, #tpu.memory_space<vmem>>, %arg20: memref<1x128xf32, #tpu.memory_space<vmem>>, %arg21: memref<1x128xf32, #tpu.memory_space<vmem>>, %arg22: memref<16x128xf32, #tpu.memory_space<vmem>>, %arg23: memref<16x128xf32, #tpu.memory_space<vmem>>, %arg24: memref<16x128xf32, #tpu.memory_space<vmem>>) attributes {dimension_semantics = [#tpu.dimension_semantics<arbitrary>], iteration_bounds = array<i64: 1>, scalar_prefetch = 0 : i64, scratch_operands = 0 : i64, tpu.core_type = #tpu.core_type<tc>, window_params = [{pipeline_mode = #tpu.pipeline_mode<synchronous>, transform_indices = @transform_0, window_bounds = array<i64: 16, 32>}, {pipeline_mode = #tpu.pipeline_mode<synchronous>, transform_indices = @transform_1, window_bounds = array<i64: 32, 16>}, {pipeline_mode = #tpu.pipeline_mode<synchronous>, transform_indices = @transform_2, window_bounds = array<i64: 32, 16>}, {pipeline_mode = #tpu.pipeline_mode<synchronous>, transform_indices = @transform_3, window_bounds = array<i64: 32, 16>}, {pipeline_mode = #tpu.pipeline_mode<synchronous>, transform_indices = @transform_4, window_bounds = array<i64: 16, 32>}, {pipeline_mode = #tpu.pipeline_mode<synchronous>, transform_indices = @transform_5, window_bounds = array<i64: 32, 16>}, {pipeline_mode = #tpu.pipeline_mode<synchronous>, transform_indices = @transform_6, window_bounds = array<i64: 32, 16>}, {pipeline_mode = #tpu.pipeline_mode<synchronous>, transform_indices = @transform_7, window_bounds = array<i64: 32, 16>}, {pipeline_mode = #tpu.pipeline_mode<synchronous>, transform_indices = @transform_8, window_bounds = array<i64: 16, 32>}, {pipeline_mode = #tpu.pipeline_mode<synchronous>, transform_indices = @transform_9, window_bounds = array<i64: 352, 128>}, {pipeline_mode = #tpu.pipeline_mode<synchronous>, transform_indices = @transform_10, window_bounds = array<i64: 1, 128>}, {pipeline_mode = #tpu.pipeline_mode<synchronous>, transform_indices = @transform_11, window_bounds = array<i64: 1, 128>}, {pipeline_mode = #tpu.pipeline_mode<synchronous>, transform_indices = @transform_12, window_bounds = array<i64: 128, 128>}, {pipeline_mode = #tpu.pipeline_mode<synchronous>, transform_indices = @transform_13, window_bounds = array<i64: 1, 128>}, {pipeline_mode = #tpu.pipeline_mode<synchronous>, transform_indices = @transform_14, window_bounds = array<i64: 1, 128>}, {pipeline_mode = #tpu.pipeline_mode<synchronous>, transform_indices = @transform_15, window_bounds = array<i64: 160, 128>}, {pipeline_mode = #tpu.pipeline_mode<synchronous>, transform_indices = @transform_16, window_bounds = array<i64: 1, 128>}, {pipeline_mode = #tpu.pipeline_mode<synchronous>, transform_indices = @transform_17, window_bounds = array<i64: 1, 128>}, {pipeline_mode = #tpu.pipeline_mode<synchronous>, transform_indices = @transform_18, window_bounds = array<i64: 128, 128>}, {pipeline_mode = #tpu.pipeline_mode<synchronous>, transform_indices = @transform_19, window_bounds = array<i64: 1, 128>}, {pipeline_mode = #tpu.pipeline_mode<synchronous>, transform_indices = @transform_20, window_bounds = array<i64: 1, 128>}, {pipeline_mode = #tpu.pipeline_mode<synchronous>, transform_indices = @transform_21, window_bounds = array<i64: 16, 128>}, {pipeline_mode = #tpu.pipeline_mode<synchronous>, transform_indices = @transform_22, window_bounds = array<i64: 16, 128>}, {pipeline_mode = #tpu.pipeline_mode<synchronous>, transform_indices = @transform_23, window_bounds = array<i64: 16, 128>}]} {
    %c0 = arith.constant 0 : index
    %c0_0 = arith.constant 0 : index
    %0 = vector.load %arg1[%c0, %c0_0] : memref<16x32xf32, #tpu.memory_space<vmem>>, vector<16x32xf32>
    %cst = arith.constant 0.000000e+00 : f32
    %1 = vector.broadcast %cst : f32 to vector<32x160xf32>
    %c0_1 = arith.constant 0 : index
    %c0_2 = arith.constant 0 : index
    %2 = vector.load %arg2[%c0_1, %c0_2] : memref<32x16xf32, #tpu.memory_space<vmem>>, vector<32x16xf32>
    %cst_3 = arith.constant dense<0.000000e+00> : vector<32x32xf32>
    %3 = tpu.matmul %2, %0, %cst_3 {dimension_numbers = #tpu.dot_dimension_numbers<[1], [0], [0], [1], [0, 0, 1, 1], [], []>} : vector<32x16xf32>, vector<16x32xf32>, vector<32x32xf32> -> vector<32x32xf32>
    %4 = vector.extract_strided_slice %3 {offsets = [0, 0], sizes = [16, 32], strides = [1, 1]} : vector<32x32xf32> to vector<16x32xf32>
    %5 = vector.extract_strided_slice %3 {offsets = [16, 0], sizes = [16, 32], strides = [1, 1]} : vector<32x32xf32> to vector<16x32xf32>
    %6 = tpu.concatenate %4, %5 in 1 : vector<16x32xf32>, vector<16x32xf32> -> vector<16x64xf32>
    %c0_4 = arith.constant 0 : index
    %c0_5 = arith.constant 0 : index
    %7 = vector.load %arg3[%c0_4, %c0_5] : memref<32x16xf32, #tpu.memory_space<vmem>>, vector<32x16xf32>
    %cst_6 = arith.constant dense<0.000000e+00> : vector<32x64xf32>
    %8 = tpu.matmul %7, %6, %cst_6 {dimension_numbers = #tpu.dot_dimension_numbers<[1], [0], [0], [1], [0, 0, 1, 1], [], []>} : vector<32x16xf32>, vector<16x64xf32>, vector<32x64xf32> -> vector<32x64xf32>
    %9 = vector.extract_strided_slice %8 {offsets = [0, 0], sizes = [16, 64], strides = [1, 1]} : vector<32x64xf32> to vector<16x64xf32>
    %10 = vector.extract_strided_slice %8 {offsets = [16, 0], sizes = [16, 64], strides = [1, 1]} : vector<32x64xf32> to vector<16x64xf32>
    %11 = tpu.concatenate %9, %10 in 1 : vector<16x64xf32>, vector<16x64xf32> -> vector<16x128xf32>
    %c0_7 = arith.constant 0 : index
    %c0_8 = arith.constant 0 : index
    %12 = vector.load %arg5[%c0_7, %c0_8] : memref<16x32xf32, #tpu.memory_space<vmem>>, vector<16x32xf32>
    %13 = tpu.concatenate %11, %12 in 1 : vector<16x128xf32>, vector<16x32xf32> -> vector<16x160xf32>
    %c0_9 = arith.constant 0 : index
    %c0_10 = arith.constant 0 : index
    %14 = vector.load %arg4[%c0_9, %c0_10] : memref<32x16xf32, #tpu.memory_space<vmem>>, vector<32x16xf32>
    %cst_11 = arith.constant dense<0.000000e+00> : vector<32x160xf32>
    %15 = tpu.matmul %14, %13, %cst_11 {dimension_numbers = #tpu.dot_dimension_numbers<[1], [0], [0], [1], [0, 0, 1, 1], [], []>} : vector<32x16xf32>, vector<16x160xf32>, vector<32x160xf32> -> vector<32x160xf32>
    %16 = arith.addf %1, %15 : vector<32x160xf32>
    %17 = tpu.iota {dimensions = array<i32: 0>} : vector<16x1xi32>
    %c10_i32 = arith.constant 10 : i32
    %18 = vector.broadcast %c10_i32 : i32 to vector<16x1xi32>
    %19 = arith.cmpi slt, %17, %18 : vector<16x1xi32>
    %20 = arith.extui %19 : vector<16x1xi1> to vector<16x1xi32>
    %21 = arith.sitofp %20 : vector<16x1xi32> to vector<16x1xf32>
    %c0_12 = arith.constant 0 : index
    %c0_13 = arith.constant 0 : index
    %22 = vector.load %arg16[%c0_12, %c0_13] : memref<160x128xf32, #tpu.memory_space<vmem>>, vector<160x128xf32>
    %cst_14 = arith.constant dense<0.000000e+00> : vector<16x128xf32>
    %23 = tpu.matmul %13, %22, %cst_14 {dimension_numbers = #tpu.dot_dimension_numbers<[1], [0], [0], [1], [0, 0, 1, 1], [], []>} : vector<16x160xf32>, vector<160x128xf32>, vector<16x128xf32> -> vector<16x128xf32>
    %c0_15 = arith.constant 0 : index
    %c0_16 = arith.constant 0 : index
    %24 = vector.load %arg17[%c0_15, %c0_16] : memref<1x128xf32, #tpu.memory_space<vmem>>, vector<1x128xf32>
    %c0_17 = arith.constant 0 : index
    %c0_18 = arith.constant 0 : index
    %25 = vector.load %arg18[%c0_17, %c0_18] : memref<1x128xf32, #tpu.memory_space<vmem>>, vector<1x128xf32>
    %cst_19 = arith.constant dense<0.000000e+00> : vector<128xf32>
    %26 = vector.multi_reduction <add>, %23, %cst_19 [0] : vector<16x128xf32> to vector<128xf32>
    %27 = vector.shape_cast %26 : vector<128xf32> to vector<1x128xf32>
    %cst_20 = arith.constant 1.000000e-01 : f32
    %28 = vector.broadcast %cst_20 : f32 to vector<1x128xf32>
    %29 = arith.mulf %27, %28 : vector<1x128xf32>
    %30 = vector.broadcast %29 : vector<1x128xf32> to vector<16x128xf32>
    %31 = arith.subf %23, %30 : vector<16x128xf32>
    %32 = vector.broadcast %21 : vector<16x1xf32> to vector<16x128xf32>
    %33 = arith.mulf %31, %32 : vector<16x128xf32>
    %34 = arith.mulf %33, %33 : vector<16x128xf32>
    %cst_21 = arith.constant dense<0.000000e+00> : vector<128xf32>
    %35 = vector.multi_reduction <add>, %34, %cst_21 [0] : vector<16x128xf32> to vector<128xf32>
    %36 = vector.shape_cast %35 : vector<128xf32> to vector<1x128xf32>
    %cst_22 = arith.constant 1.000000e-01 : f32
    %37 = vector.broadcast %cst_22 : f32 to vector<1x128xf32>
    %38 = arith.mulf %36, %37 : vector<1x128xf32>
    %cst_23 = arith.constant 9.99999974E-6 : f32
    %39 = vector.broadcast %cst_23 : f32 to vector<1x128xf32>
    %40 = arith.addf %38, %39 : vector<1x128xf32>
    %41 = math.rsqrt %40 : vector<1x128xf32>
    %42 = vector.broadcast %41 : vector<1x128xf32> to vector<16x128xf32>
    %43 = arith.mulf %33, %42 : vector<16x128xf32>
    %44 = vector.broadcast %24 : vector<1x128xf32> to vector<16x128xf32>
    %45 = arith.mulf %43, %44 : vector<16x128xf32>
    %46 = vector.broadcast %25 : vector<1x128xf32> to vector<16x128xf32>
    %47 = arith.addf %45, %46 : vector<16x128xf32>
    %cst_24 = arith.constant 0.000000e+00 : f32
    %48 = vector.broadcast %cst_24 : f32 to vector<16x128xf32>
    %49 = arith.maximumf %47, %48 : vector<16x128xf32>
    %50 = vector.broadcast %21 : vector<16x1xf32> to vector<16x128xf32>
    %51 = arith.mulf %49, %50 : vector<16x128xf32>
    %c0_25 = arith.constant 0 : index
    %c0_26 = arith.constant 0 : index
    %52 = vector.load %arg19[%c0_25, %c0_26] : memref<128x128xf32, #tpu.memory_space<vmem>>, vector<128x128xf32>
    %cst_27 = arith.constant dense<0.000000e+00> : vector<16x128xf32>
    %53 = tpu.matmul %51, %52, %cst_27 {dimension_numbers = #tpu.dot_dimension_numbers<[1], [0], [0], [1], [0, 0, 1, 1], [], []>} : vector<16x128xf32>, vector<128x128xf32>, vector<16x128xf32> -> vector<16x128xf32>
    %c0_28 = arith.constant 0 : index
    %c0_29 = arith.constant 0 : index
    %54 = vector.load %arg20[%c0_28, %c0_29] : memref<1x128xf32, #tpu.memory_space<vmem>>, vector<1x128xf32>
    %c0_30 = arith.constant 0 : index
    %c0_31 = arith.constant 0 : index
    %55 = vector.load %arg21[%c0_30, %c0_31] : memref<1x128xf32, #tpu.memory_space<vmem>>, vector<1x128xf32>
    %cst_32 = arith.constant dense<0.000000e+00> : vector<128xf32>
    %56 = vector.multi_reduction <add>, %53, %cst_32 [0] : vector<16x128xf32> to vector<128xf32>
    %57 = vector.shape_cast %56 : vector<128xf32> to vector<1x128xf32>
    %cst_33 = arith.constant 1.000000e-01 : f32
    %58 = vector.broadcast %cst_33 : f32 to vector<1x128xf32>
    %59 = arith.mulf %57, %58 : vector<1x128xf32>
    %60 = vector.broadcast %59 : vector<1x128xf32> to vector<16x128xf32>
    %61 = arith.subf %53, %60 : vector<16x128xf32>
    %62 = vector.broadcast %21 : vector<16x1xf32> to vector<16x128xf32>
    %63 = arith.mulf %61, %62 : vector<16x128xf32>
    %64 = arith.mulf %63, %63 : vector<16x128xf32>
    %cst_34 = arith.constant dense<0.000000e+00> : vector<128xf32>
    %65 = vector.multi_reduction <add>, %64, %cst_34 [0] : vector<16x128xf32> to vector<128xf32>
    %66 = vector.shape_cast %65 : vector<128xf32> to vector<1x128xf32>
    %cst_35 = arith.constant 1.000000e-01 : f32
    %67 = vector.broadcast %cst_35 : f32 to vector<1x128xf32>
    %68 = arith.mulf %66, %67 : vector<1x128xf32>
    %cst_36 = arith.constant 9.99999974E-6 : f32
    %69 = vector.broadcast %cst_36 : f32 to vector<1x128xf32>
    %70 = arith.addf %68, %69 : vector<1x128xf32>
    %71 = math.rsqrt %70 : vector<1x128xf32>
    %72 = vector.broadcast %71 : vector<1x128xf32> to vector<16x128xf32>
    %73 = arith.mulf %63, %72 : vector<16x128xf32>
    %74 = vector.broadcast %54 : vector<1x128xf32> to vector<16x128xf32>
    %75 = arith.mulf %73, %74 : vector<16x128xf32>
    %76 = vector.broadcast %55 : vector<1x128xf32> to vector<16x128xf32>
    %77 = arith.addf %75, %76 : vector<16x128xf32>
    %cst_37 = arith.constant 0.000000e+00 : f32
    %78 = vector.broadcast %cst_37 : f32 to vector<16x128xf32>
    %79 = arith.maximumf %77, %78 : vector<16x128xf32>
    %80 = vector.broadcast %21 : vector<16x1xf32> to vector<16x128xf32>
    %81 = arith.mulf %79, %80 : vector<16x128xf32>
    %c0_38 = arith.constant 0 : index
    %c0_39 = arith.constant 0 : index
    %82 = vector.load %arg23[%c0_38, %c0_39] : memref<16x128xf32, #tpu.memory_space<vmem>>, vector<16x128xf32>
    tpu.vector_store %arg23[%c0_38, %c0_39], %81 {strides = array<i32>} : memref<16x128xf32, #tpu.memory_space<vmem>>, vector<16x128xf32>,
    %c0_40 = arith.constant 0 : index
    %c0_41 = arith.constant 0 : index
    %83 = vector.load %arg6[%c0_40, %c0_41] : memref<32x16xf32, #tpu.memory_space<vmem>>, vector<32x16xf32>
    %cst_42 = arith.constant dense<0.000000e+00> : vector<32x32xf32>
    %84 = tpu.matmul %83, %0, %cst_42 {dimension_numbers = #tpu.dot_dimension_numbers<[1], [0], [0], [1], [0, 0, 1, 1], [], []>} : vector<32x16xf32>, vector<16x32xf32>, vector<32x32xf32> -> vector<32x32xf32>
    %85 = vector.extract_strided_slice %84 {offsets = [0, 0], sizes = [16, 32], strides = [1, 1]} : vector<32x32xf32> to vector<16x32xf32>
    %86 = vector.extract_strided_slice %84 {offsets = [16, 0], sizes = [16, 32], strides = [1, 1]} : vector<32x32xf32> to vector<16x32xf32>
    %87 = tpu.concatenate %85, %86 in 1 : vector<16x32xf32>, vector<16x32xf32> -> vector<16x64xf32>
    %c0_43 = arith.constant 0 : index
    %c0_44 = arith.constant 0 : index
    %88 = vector.load %arg7[%c0_43, %c0_44] : memref<32x16xf32, #tpu.memory_space<vmem>>, vector<32x16xf32>
    %cst_45 = arith.constant dense<0.000000e+00> : vector<32x64xf32>
    %89 = tpu.matmul %88, %87, %cst_45 {dimension_numbers = #tpu.dot_dimension_numbers<[1], [0], [0], [1], [0, 0, 1, 1], [], []>} : vector<32x16xf32>, vector<16x64xf32>, vector<32x64xf32> -> vector<32x64xf32>
    %90 = vector.extract_strided_slice %89 {offsets = [0, 0], sizes = [16, 64], strides = [1, 1]} : vector<32x64xf32> to vector<16x64xf32>
    %91 = vector.extract_strided_slice %89 {offsets = [16, 0], sizes = [16, 64], strides = [1, 1]} : vector<32x64xf32> to vector<16x64xf32>
    %92 = tpu.concatenate %90, %91 in 1 : vector<16x64xf32>, vector<16x64xf32> -> vector<16x128xf32>
    %c0_46 = arith.constant 0 : index
    %c0_47 = arith.constant 0 : index
    %93 = vector.load %arg9[%c0_46, %c0_47] : memref<16x32xf32, #tpu.memory_space<vmem>>, vector<16x32xf32>
    %94 = tpu.concatenate %92, %93 in 1 : vector<16x128xf32>, vector<16x32xf32> -> vector<16x160xf32>
    %c0_48 = arith.constant 0 : index
    %c0_49 = arith.constant 0 : index
    %95 = vector.load %arg8[%c0_48, %c0_49] : memref<32x16xf32, #tpu.memory_space<vmem>>, vector<32x16xf32>
    %cst_50 = arith.constant dense<0.000000e+00> : vector<32x160xf32>
    %96 = tpu.matmul %95, %94, %cst_50 {dimension_numbers = #tpu.dot_dimension_numbers<[1], [0], [0], [1], [0, 0, 1, 1], [], []>} : vector<32x16xf32>, vector<16x160xf32>, vector<32x160xf32> -> vector<32x160xf32>
    %97 = arith.addf %16, %96 : vector<32x160xf32>
    %98 = tpu.iota {dimensions = array<i32: 0>} : vector<16x1xi32>
    %c12_i32 = arith.constant 12 : i32
    %99 = vector.broadcast %c12_i32 : i32 to vector<16x1xi32>
    %100 = arith.cmpi slt, %98, %99 : vector<16x1xi32>
    %101 = arith.extui %100 : vector<16x1xi1> to vector<16x1xi32>
    %102 = arith.sitofp %101 : vector<16x1xi32> to vector<16x1xf32>
    %c0_51 = arith.constant 0 : index
    %c0_52 = arith.constant 0 : index
    %103 = vector.load %arg16[%c0_51, %c0_52] : memref<160x128xf32, #tpu.memory_space<vmem>>, vector<160x128xf32>
    %cst_53 = arith.constant dense<0.000000e+00> : vector<16x128xf32>
    %104 = tpu.matmul %94, %103, %cst_53 {dimension_numbers = #tpu.dot_dimension_numbers<[1], [0], [0], [1], [0, 0, 1, 1], [], []>} : vector<16x160xf32>, vector<160x128xf32>, vector<16x128xf32> -> vector<16x128xf32>
    %c0_54 = arith.constant 0 : index
    %c0_55 = arith.constant 0 : index
    %105 = vector.load %arg17[%c0_54, %c0_55] : memref<1x128xf32, #tpu.memory_space<vmem>>, vector<1x128xf32>
    %c0_56 = arith.constant 0 : index
    %c0_57 = arith.constant 0 : index
    %106 = vector.load %arg18[%c0_56, %c0_57] : memref<1x128xf32, #tpu.memory_space<vmem>>, vector<1x128xf32>
    %cst_58 = arith.constant dense<0.000000e+00> : vector<128xf32>
    %107 = vector.multi_reduction <add>, %104, %cst_58 [0] : vector<16x128xf32> to vector<128xf32>
    %108 = vector.shape_cast %107 : vector<128xf32> to vector<1x128xf32>
    %cst_59 = arith.constant 0.0833333358 : f32
    %109 = vector.broadcast %cst_59 : f32 to vector<1x128xf32>
    %110 = arith.mulf %108, %109 : vector<1x128xf32>
    %111 = vector.broadcast %110 : vector<1x128xf32> to vector<16x128xf32>
    %112 = arith.subf %104, %111 : vector<16x128xf32>
    %113 = vector.broadcast %102 : vector<16x1xf32> to vector<16x128xf32>
    %114 = arith.mulf %112, %113 : vector<16x128xf32>
    %115 = arith.mulf %114, %114 : vector<16x128xf32>
    %cst_60 = arith.constant dense<0.000000e+00> : vector<128xf32>
    %116 = vector.multi_reduction <add>, %115, %cst_60 [0] : vector<16x128xf32> to vector<128xf32>
    %117 = vector.shape_cast %116 : vector<128xf32> to vector<1x128xf32>
    %cst_61 = arith.constant 0.0833333358 : f32
    %118 = vector.broadcast %cst_61 : f32 to vector<1x128xf32>
    %119 = arith.mulf %117, %118 : vector<1x128xf32>
    %cst_62 = arith.constant 9.99999974E-6 : f32
    %120 = vector.broadcast %cst_62 : f32 to vector<1x128xf32>
    %121 = arith.addf %119, %120 : vector<1x128xf32>
    %122 = math.rsqrt %121 : vector<1x128xf32>
    %123 = vector.broadcast %122 : vector<1x128xf32> to vector<16x128xf32>
    %124 = arith.mulf %114, %123 : vector<16x128xf32>
    %125 = vector.broadcast %105 : vector<1x128xf32> to vector<16x128xf32>
    %126 = arith.mulf %124, %125 : vector<16x128xf32>
    %127 = vector.broadcast %106 : vector<1x128xf32> to vector<16x128xf32>
    %128 = arith.addf %126, %127 : vector<16x128xf32>
    %cst_63 = arith.constant 0.000000e+00 : f32
    %129 = vector.broadcast %cst_63 : f32 to vector<16x128xf32>
    %130 = arith.maximumf %128, %129 : vector<16x128xf32>
    %131 = vector.broadcast %102 : vector<16x1xf32> to vector<16x128xf32>
    %132 = arith.mulf %130, %131 : vector<16x128xf32>
    %c0_64 = arith.constant 0 : index
    %c0_65 = arith.constant 0 : index
    %133 = vector.load %arg19[%c0_64, %c0_65] : memref<128x128xf32, #tpu.memory_space<vmem>>, vector<128x128xf32>
    %cst_66 = arith.constant dense<0.000000e+00> : vector<16x128xf32>
    %134 = tpu.matmul %132, %133, %cst_66 {dimension_numbers = #tpu.dot_dimension_numbers<[1], [0], [0], [1], [0, 0, 1, 1], [], []>} : vector<16x128xf32>, vector<128x128xf32>, vector<16x128xf32> -> vector<16x128xf32>
    %c0_67 = arith.constant 0 : index
    %c0_68 = arith.constant 0 : index
    %135 = vector.load %arg20[%c0_67, %c0_68] : memref<1x128xf32, #tpu.memory_space<vmem>>, vector<1x128xf32>
    %c0_69 = arith.constant 0 : index
    %c0_70 = arith.constant 0 : index
    %136 = vector.load %arg21[%c0_69, %c0_70] : memref<1x128xf32, #tpu.memory_space<vmem>>, vector<1x128xf32>
    %cst_71 = arith.constant dense<0.000000e+00> : vector<128xf32>
    %137 = vector.multi_reduction <add>, %134, %cst_71 [0] : vector<16x128xf32> to vector<128xf32>
    %138 = vector.shape_cast %137 : vector<128xf32> to vector<1x128xf32>
    %cst_72 = arith.constant 0.0833333358 : f32
    %139 = vector.broadcast %cst_72 : f32 to vector<1x128xf32>
    %140 = arith.mulf %138, %139 : vector<1x128xf32>
    %141 = vector.broadcast %140 : vector<1x128xf32> to vector<16x128xf32>
    %142 = arith.subf %134, %141 : vector<16x128xf32>
    %143 = vector.broadcast %102 : vector<16x1xf32> to vector<16x128xf32>
    %144 = arith.mulf %142, %143 : vector<16x128xf32>
    %145 = arith.mulf %144, %144 : vector<16x128xf32>
    %cst_73 = arith.constant dense<0.000000e+00> : vector<128xf32>
    %146 = vector.multi_reduction <add>, %145, %cst_73 [0] : vector<16x128xf32> to vector<128xf32>
    %147 = vector.shape_cast %146 : vector<128xf32> to vector<1x128xf32>
    %cst_74 = arith.constant 0.0833333358 : f32
    %148 = vector.broadcast %cst_74 : f32 to vector<1x128xf32>
    %149 = arith.mulf %147, %148 : vector<1x128xf32>
    %cst_75 = arith.constant 9.99999974E-6 : f32
    %150 = vector.broadcast %cst_75 : f32 to vector<1x128xf32>
    %151 = arith.addf %149, %150 : vector<1x128xf32>
    %152 = math.rsqrt %151 : vector<1x128xf32>
    %153 = vector.broadcast %152 : vector<1x128xf32> to vector<16x128xf32>
    %154 = arith.mulf %144, %153 : vector<16x128xf32>
    %155 = vector.broadcast %135 : vector<1x128xf32> to vector<16x128xf32>
    %156 = arith.mulf %154, %155 : vector<16x128xf32>
    %157 = vector.broadcast %136 : vector<1x128xf32> to vector<16x128xf32>
    %158 = arith.addf %156, %157 : vector<16x128xf32>
    %cst_76 = arith.constant 0.000000e+00 : f32
    %159 = vector.broadcast %cst_76 : f32 to vector<16x128xf32>
    %160 = arith.maximumf %158, %159 : vector<16x128xf32>
    %161 = vector.broadcast %102 : vector<16x1xf32> to vector<16x128xf32>
    %162 = arith.mulf %160, %161 : vector<16x128xf32>
    %c0_77 = arith.constant 0 : index
    %c0_78 = arith.constant 0 : index
    %163 = vector.load %arg24[%c0_77, %c0_78] : memref<16x128xf32, #tpu.memory_space<vmem>>, vector<16x128xf32>
    tpu.vector_store %arg24[%c0_77, %c0_78], %162 {strides = array<i32>} : memref<16x128xf32, #tpu.memory_space<vmem>>, vector<16x128xf32>,
    %164 = vector.extract_strided_slice %97 {offsets = [0, 0], sizes = [16, 160], strides = [1, 1]} : vector<32x160xf32> to vector<16x160xf32>
    %165 = vector.extract_strided_slice %97 {offsets = [16, 0], sizes = [16, 160], strides = [1, 1]} : vector<32x160xf32> to vector<16x160xf32>
    %166 = tpu.concatenate %0, %164, %165 in 1 : vector<16x32xf32>, vector<16x160xf32>, vector<16x160xf32> -> vector<16x352xf32>
    %c0_79 = arith.constant 0 : index
    %c0_80 = arith.constant 0 : index
    %167 = vector.load %arg10[%c0_79, %c0_80] : memref<352x128xf32, #tpu.memory_space<vmem>>, vector<352x128xf32>
    %cst_81 = arith.constant dense<0.000000e+00> : vector<16x128xf32>
    %168 = tpu.matmul %166, %167, %cst_81 {dimension_numbers = #tpu.dot_dimension_numbers<[1], [0], [0], [1], [0, 0, 1, 1], [], []>} : vector<16x352xf32>, vector<352x128xf32>, vector<16x128xf32> -> vector<16x128xf32>
    %c0_82 = arith.constant 0 : index
    %c0_83 = arith.constant 0 : index
    %169 = vector.load %arg11[%c0_82, %c0_83] : memref<1x128xf32, #tpu.memory_space<vmem>>, vector<1x128xf32>
    %c0_84 = arith.constant 0 : index
    %c0_85 = arith.constant 0 : index
    %170 = vector.load %arg12[%c0_84, %c0_85] : memref<1x128xf32, #tpu.memory_space<vmem>>, vector<1x128xf32>
    %cst_86 = arith.constant dense<0.000000e+00> : vector<128xf32>
    %171 = vector.multi_reduction <add>, %168, %cst_86 [0] : vector<16x128xf32> to vector<128xf32>
    %172 = vector.shape_cast %171 : vector<128xf32> to vector<1x128xf32>
    %cst_87 = arith.constant 6.250000e-02 : f32
    %173 = vector.broadcast %cst_87 : f32 to vector<1x128xf32>
    %174 = arith.mulf %172, %173 : vector<1x128xf32>
    %175 = vector.broadcast %174 : vector<1x128xf32> to vector<16x128xf32>
    %176 = arith.subf %168, %175 : vector<16x128xf32>
    %177 = arith.mulf %176, %176 : vector<16x128xf32>
    %cst_88 = arith.constant dense<0.000000e+00> : vector<128xf32>
    %178 = vector.multi_reduction <add>, %177, %cst_88 [0] : vector<16x128xf32> to vector<128xf32>
    %179 = vector.shape_cast %178 : vector<128xf32> to vector<1x128xf32>
    %cst_89 = arith.constant 6.250000e-02 : f32
    %180 = vector.broadcast %cst_89 : f32 to vector<1x128xf32>
    %181 = arith.mulf %179, %180 : vector<1x128xf32>
    %cst_90 = arith.constant 9.99999974E-6 : f32
    %182 = vector.broadcast %cst_90 : f32 to vector<1x128xf32>
    %183 = arith.addf %181, %182 : vector<1x128xf32>
    %184 = math.rsqrt %183 : vector<1x128xf32>
    %185 = vector.broadcast %184 : vector<1x128xf32> to vector<16x128xf32>
    %186 = arith.mulf %176, %185 : vector<16x128xf32>
    %187 = vector.broadcast %169 : vector<1x128xf32> to vector<16x128xf32>
    %188 = arith.mulf %186, %187 : vector<16x128xf32>
    %189 = vector.broadcast %170 : vector<1x128xf32> to vector<16x128xf32>
    %190 = arith.addf %188, %189 : vector<16x128xf32>
    %cst_91 = arith.constant 0.000000e+00 : f32
    %191 = vector.broadcast %cst_91 : f32 to vector<16x128xf32>
    %192 = arith.maximumf %190, %191 : vector<16x128xf32>
    %c0_92 = arith.constant 0 : index
    %c0_93 = arith.constant 0 : index
    %193 = vector.load %arg13[%c0_92, %c0_93] : memref<128x128xf32, #tpu.memory_space<vmem>>, vector<128x128xf32>
    %cst_94 = arith.constant dense<0.000000e+00> : vector<16x128xf32>
    %194 = tpu.matmul %192, %193, %cst_94 {dimension_numbers = #tpu.dot_dimension_numbers<[1], [0], [0], [1], [0, 0, 1, 1], [], []>} : vector<16x128xf32>, vector<128x128xf32>, vector<16x128xf32> -> vector<16x128xf32>
    %c0_95 = arith.constant 0 : index
    %c0_96 = arith.constant 0 : index
    %195 = vector.load %arg14[%c0_95, %c0_96] : memref<1x128xf32, #tpu.memory_space<vmem>>, vector<1x128xf32>
    %c0_97 = arith.constant 0 : index
    %c0_98 = arith.constant 0 : index
    %196 = vector.load %arg15[%c0_97, %c0_98] : memref<1x128xf32, #tpu.memory_space<vmem>>, vector<1x128xf32>
    %cst_99 = arith.constant dense<0.000000e+00> : vector<128xf32>
    %197 = vector.multi_reduction <add>, %194, %cst_99 [0] : vector<16x128xf32> to vector<128xf32>
    %198 = vector.shape_cast %197 : vector<128xf32> to vector<1x128xf32>
    %cst_100 = arith.constant 6.250000e-02 : f32
    %199 = vector.broadcast %cst_100 : f32 to vector<1x128xf32>
    %200 = arith.mulf %198, %199 : vector<1x128xf32>
    %201 = vector.broadcast %200 : vector<1x128xf32> to vector<16x128xf32>
    %202 = arith.subf %194, %201 : vector<16x128xf32>
    %203 = arith.mulf %202, %202 : vector<16x128xf32>
    %cst_101 = arith.constant dense<0.000000e+00> : vector<128xf32>
    %204 = vector.multi_reduction <add>, %203, %cst_101 [0] : vector<16x128xf32> to vector<128xf32>
    %205 = vector.shape_cast %204 : vector<128xf32> to vector<1x128xf32>
    %cst_102 = arith.constant 6.250000e-02 : f32
    %206 = vector.broadcast %cst_102 : f32 to vector<1x128xf32>
    %207 = arith.mulf %205, %206 : vector<1x128xf32>
    %cst_103 = arith.constant 9.99999974E-6 : f32
    %208 = vector.broadcast %cst_103 : f32 to vector<1x128xf32>
    %209 = arith.addf %207, %208 : vector<1x128xf32>
    %210 = math.rsqrt %209 : vector<1x128xf32>
    %211 = vector.broadcast %210 : vector<1x128xf32> to vector<16x128xf32>
    %212 = arith.mulf %202, %211 : vector<16x128xf32>
    %213 = vector.broadcast %195 : vector<1x128xf32> to vector<16x128xf32>
    %214 = arith.mulf %212, %213 : vector<16x128xf32>
    %215 = vector.broadcast %196 : vector<1x128xf32> to vector<16x128xf32>
    %216 = arith.addf %214, %215 : vector<16x128xf32>
    %cst_104 = arith.constant 0.000000e+00 : f32
    %217 = vector.broadcast %cst_104 : f32 to vector<16x128xf32>
    %218 = arith.maximumf %216, %217 : vector<16x128xf32>
    %c0_105 = arith.constant 0 : index
    %c0_106 = arith.constant 0 : index
    %219 = vector.load %arg22[%c0_105, %c0_106] : memref<16x128xf32, #tpu.memory_space<vmem>>, vector<16x128xf32>
    tpu.vector_store %arg22[%c0_105, %c0_106], %218 {strides = array<i32>} : memref<16x128xf32, #tpu.memory_space<vmem>>, vector<16x128xf32>,
    return
  }
  func.func @transform_0(%arg0: i32) -> (i32, i32) {
    %c0_i32 = arith.constant 0 : i32
    %c0_i32_0 = arith.constant 0 : i32
    %c0_i32_1 = arith.constant 0 : i32
    return %c0_i32, %c0_i32_0 : i32, i32
  }
  func.func @transform_1(%arg0: i32) -> (i32, i32) {
    %c0_i32 = arith.constant 0 : i32
    %c0_i32_0 = arith.constant 0 : i32
    %c0_i32_1 = arith.constant 0 : i32
    return %c0_i32, %c0_i32_0 : i32, i32
  }
  func.func @transform_2(%arg0: i32) -> (i32, i32) {
    %c0_i32 = arith.constant 0 : i32
    %c0_i32_0 = arith.constant 0 : i32
    %c0_i32_1 = arith.constant 0 : i32
    return %c0_i32, %c0_i32_0 : i32, i32
  }
  func.func @transform_3(%arg0: i32) -> (i32, i32) {
    %c0_i32 = arith.constant 0 : i32
    %c0_i32_0 = arith.constant 0 : i32
    %c0_i32_1 = arith.constant 0 : i32
    return %c0_i32, %c0_i32_0 : i32, i32
  }
  func.func @transform_4(%arg0: i32) -> (i32, i32) {
    %c0_i32 = arith.constant 0 : i32
    %c0_i32_0 = arith.constant 0 : i32
    %c0_i32_1 = arith.constant 0 : i32
    return %c0_i32, %c0_i32_0 : i32, i32
  }
  func.func @transform_5(%arg0: i32) -> (i32, i32) {
    %c0_i32 = arith.constant 0 : i32
    %c0_i32_0 = arith.constant 0 : i32
    %c0_i32_1 = arith.constant 0 : i32
    return %c0_i32, %c0_i32_0 : i32, i32
  }
  func.func @transform_6(%arg0: i32) -> (i32, i32) {
    %c0_i32 = arith.constant 0 : i32
    %c0_i32_0 = arith.constant 0 : i32
    %c0_i32_1 = arith.constant 0 : i32
    return %c0_i32, %c0_i32_0 : i32, i32
  }
  func.func @transform_7(%arg0: i32) -> (i32, i32) {
    %c0_i32 = arith.constant 0 : i32
    %c0_i32_0 = arith.constant 0 : i32
    %c0_i32_1 = arith.constant 0 : i32
    return %c0_i32, %c0_i32_0 : i32, i32
  }
  func.func @transform_8(%arg0: i32) -> (i32, i32) {
    %c0_i32 = arith.constant 0 : i32
    %c0_i32_0 = arith.constant 0 : i32
    %c0_i32_1 = arith.constant 0 : i32
    return %c0_i32, %c0_i32_0 : i32, i32
  }
  func.func @transform_9(%arg0: i32) -> (i32, i32) {
    %c0_i32 = arith.constant 0 : i32
    %c0_i32_0 = arith.constant 0 : i32
    %c0_i32_1 = arith.constant 0 : i32
    return %c0_i32, %c0_i32_0 : i32, i32
  }
  func.func @transform_10(%arg0: i32) -> (i32, i32) {
    %c0_i32 = arith.constant 0 : i32
    %c0_i32_0 = arith.constant 0 : i32
    %c0_i32_1 = arith.constant 0 : i32
    return %c0_i32, %c0_i32_0 : i32, i32
  }
  func.func @transform_11(%arg0: i32) -> (i32, i32) {
    %c0_i32 = arith.constant 0 : i32
    %c0_i32_0 = arith.constant 0 : i32
    %c0_i32_1 = arith.constant 0 : i32
    return %c0_i32, %c0_i32_0 : i32, i32
  }
  func.func @transform_12(%arg0: i32) -> (i32, i32) {
    %c0_i32 = arith.constant 0 : i32
    %c0_i32_0 = arith.constant 0 : i32
    %c0_i32_1 = arith.constant 0 : i32
    return %c0_i32, %c0_i32_0 : i32, i32
  }
  func.func @transform_13(%arg0: i32) -> (i32, i32) {
    %c0_i32 = arith.constant 0 : i32
    %c0_i32_0 = arith.constant 0 : i32
    %c0_i32_1 = arith.constant 0 : i32
    return %c0_i32, %c0_i32_0 : i32, i32
  }
  func.func @transform_14(%arg0: i32) -> (i32, i32) {
    %c0_i32 = arith.constant 0 : i32
    %c0_i32_0 = arith.constant 0 : i32
    %c0_i32_1 = arith.constant 0 : i32
    return %c0_i32, %c0_i32_0 : i32, i32
  }
  func.func @transform_15(%arg0: i32) -> (i32, i32) {
    %c0_i32 = arith.constant 0 : i32
    %c0_i32_0 = arith.constant 0 : i32
    %c0_i32_1 = arith.constant 0 : i32
    return %c0_i32, %c0_i32_0 : i32, i32
  }
  func.func @transform_16(%arg0: i32) -> (i32, i32) {
    %c0_i32 = arith.constant 0 : i32
    %c0_i32_0 = arith.constant 0 : i32
    %c0_i32_1 = arith.constant 0 : i32
    return %c0_i32, %c0_i32_0 : i32, i32
  }
  func.func @transform_17(%arg0: i32) -> (i32, i32) {
    %c0_i32 = arith.constant 0 : i32
    %c0_i32_0 = arith.constant 0 : i32
    %c0_i32_1 = arith.constant 0 : i32
    return %c0_i32, %c0_i32_0 : i32, i32
  }
  func.func @transform_18(%arg0: i32) -> (i32, i32) {
    %c0_i32 = arith.constant 0 : i32
    %c0_i32_0 = arith.constant 0 : i32
    %c0_i32_1 = arith.constant 0 : i32
    return %c0_i32, %c0_i32_0 : i32, i32
  }
  func.func @transform_19(%arg0: i32) -> (i32, i32) {
    %c0_i32 = arith.constant 0 : i32
    %c0_i32_0 = arith.constant 0 : i32
    %c0_i32_1 = arith.constant 0 : i32
    return %c0_i32, %c0_i32_0 : i32, i32
  }
  func.func @transform_20(%arg0: i32) -> (i32, i32) {
    %c0_i32 = arith.constant 0 : i32
    %c0_i32_0 = arith.constant 0 : i32
    %c0_i32_1 = arith.constant 0 : i32
    return %c0_i32, %c0_i32_0 : i32, i32
  }
  func.func @transform_21(%arg0: i32) -> (i32, i32) {
    %c0_i32 = arith.constant 0 : i32
    %c0_i32_0 = arith.constant 0 : i32
    %c0_i32_1 = arith.constant 0 : i32
    return %c0_i32, %c0_i32_0 : i32, i32
  }
  func.func @transform_22(%arg0: i32) -> (i32, i32) {
    %c0_i32 = arith.constant 0 : i32
    %c0_i32_0 = arith.constant 0 : i32
    %c0_i32_1 = arith.constant 0 : i32
    return %c0_i32, %c0_i32_0 : i32, i32
  }
  func.func @transform_23(%arg0: i32) -> (i32, i32) {
    %c0_i32 = arith.constant 0 : i32
    %c0_i32_0 = arith.constant 0 : i32
    %c0_i32_1 = arith.constant 0 : i32
    return %c0_i32, %c0_i32_0 : i32, i32
  }
}

</mosaic_0001>

<bundles_post_ra>
// kernel: edge_cycle_forward.1
= control target key start
LH: loop header
LB: loop body
LE: loop exit
PB: predicated region body
PF: predicated region fallthrough
CT: control target
= control target key end

     0   :  { %s2195_s0 = inlined_call_operand.vmem [shape: f32[16,32], index: 0, kind: input, shape index: {}]   ;;  %s2196_s1 = inlined_call_operand.vmem [shape: f32[32,16], index: 1, kind: input, shape index: {}]   ;;  %s2197_s2 = inlined_call_operand.vmem [shape: f32[32,16], index: 2, kind: input, shape index: {}]   ;;  %s2198_s3 = inlined_call_operand.vmem [shape: f32[32,16], index: 3, kind: input, shape index: {}]   ;;  %s2199_s4 = inlined_call_operand.vmem [shape: f32[16,32], index: 4, kind: input, shape index: {}]   ;;  %s2200_s5 = inlined_call_operand.vmem [shape: f32[32,16], index: 5, kind: input, shape index: {}]   ;;  %s2201_s6 = inlined_call_operand.vmem [shape: f32[32,16], index: 6, kind: input, shape index: {}]   ;;  %s2202_s7 = inlined_call_operand.vmem [shape: f32[32,16], index: 7, kind: input, shape index: {}]   ;;  %s2203_s8 = inlined_call_operand.vmem [shape: f32[16,32], index: 8, kind: input, shape index: {}]   ;;  %s2204_s9 = inlined_call_operand.vmem [shape: f32[352,128], index: 9, kind: input, shape index: {}]   ;;  %s2205_s10 = inlined_call_operand.vmem [shape: f32[1,128], index: 10, kind: input, shape index: {}]   ;;  %s2206_s11 = inlined_call_operand.vmem [shape: f32[1,128], index: 11, kind: input, shape index: {}]   ;;  %s2207_s12 = inlined_call_operand.vmem [shape: f32[128,128], index: 12, kind: input, shape index: {}]   ;;  %s2208_s13 = inlined_call_operand.vmem [shape: f32[1,128], index: 13, kind: input, shape index: {}]   ;;  %s2209_s14 = inlined_call_operand.vmem [shape: f32[1,128], index: 14, kind: input, shape index: {}]   ;;  %s2210_s15 = inlined_call_operand.vmem [shape: f32[160,128], index: 15, kind: input, shape index: {}]   ;;  %s2211_s16 = inlined_call_operand.vmem [shape: f32[1,128], index: 16, kind: input, shape index: {}]   ;;  %s2212_s17 = inlined_call_operand.vmem [shape: f32[1,128], index: 17, kind: input, shape index: {}]   ;;  %s2213_s18 = inlined_call_operand.vmem [shape: f32[128,128], index: 18, kind: input, shape index: {}]   ;;  %s2214_s19 = inlined_call_operand.vmem [shape: f32[1,128], index: 19, kind: input, shape index: {}]   ;;  %s2215_s20 = inlined_call_operand.vmem [shape: f32[1,128], index: 20, kind: input, shape index: {}]   ;;  %s2216_s21 = inlined_call_operand.hbm [shape: f32[16,128], index: 21, kind: output, shape index: {0}]   ;;  %s2217_s22 = inlined_call_operand.hbm [shape: f32[16,128], index: 22, kind: output, shape index: {1}]   ;;  %s2218_s23 = inlined_call_operand.hbm [shape: f32[16,128], index: 23, kind: output, shape index: {2}]  }
   0x1   :  { %2227 = sst [smem:[#allocation9_spill]] %s2195_s0 }
   0x2   :  { %2228 = sst [smem:[#allocation10_spill]] %s2196_s1 }
   0x3   :  { %2229 = sst [smem:[#allocation11_spill]] %s2197_s2 }
   0x4   :  { %2230 = sst [smem:[#allocation12_spill]] %s2198_s3 }
   0x5   :  { %2231 = sst [smem:[#allocation13_spill]] %s2199_s4 }
   0x6   :  { %2232 = sst [smem:[#allocation14_spill]] %s2200_s5 }
   0x7   :  { %2233 = sst [smem:[#allocation15_spill]] %s2201_s6 }
   0x8   :  { %2234 = sst [smem:[#allocation16_spill]] %s2202_s7 }
   0x9   :  { %29 = vsyncpa [#allocation3], 0  ;;  %s2235_s24 = sld [smem:[#allocation9_spill]]  ;;  %vm79_vm0 = vcmask 130048  }
   0xa   :  { %s2236_s2 = sld [smem:[#allocation10_spill]] }
   0xf   :  { %v74_v0 = vld [vmem:[%s2235_s24 + $0x8] sm:$0xff]  ;;  %v73_v1 = vld [vmem:[%s2235_s24] sm:$0xff] }
  0x10   :  { %106 = vmatpush.msra.mxu0 %v74_v0  ;;  %v75_v2 = vld [vmem:[%s2236_s2] sm:$0xff] }
  0x12   :  { %107 = vmatpush.msra.mxu0 %v73_v1 }
  0x13   :  { %1239 = vmatmul.msk.f32.vlgmr.msra.gmra.mxu0 %vm79_vm0, %v75_v2 }
  0x14   :  { %30 = vsyncpa [#allocation5], 0  ;;  %v76_v3 = vld [vmem:[%s2236_s2 + $0x8] sm:$0xff]  ;;  %v77_v4 = vld [vmem:[%s2236_s2 + $0x10] sm:$0xff]  ;;  %vm129_vm1 = vcmask 261120   ;;  %s2237_s7 = sld [smem:[#allocation13_spill]] }
  0x15   :  { %v78_v5 = vld [vmem:[%s2236_s2 + $0x18] sm:$0xff]  ;;  %v1576_v7 = vld [vmem:[%s2210_s15 + $0x90] sm:$0xff]  ;;  %v1582_v8 = vld [vmem:[%s2210_s15 + $0x88] sm:$0xff]  ;;  %s2238_s3 = sld [smem:[#allocation14_spill]]  ;;  %s1418_s0 = smov 32   ;;  %vm185_vm2 = vcmask 523264  }
  0x16   :  { %v1571_v6 = vld [vmem:[%s2210_s15 + $0x98] sm:$0xff]  ;;  %v1588_v9 = vld [vmem:[%s2210_s15 + $0x80] sm:$0xff]  ;;  %s2239_s27 = sld [smem:[#allocation11_spill]]  ;;  %v1650_v33 = vld [vmem:[%s2210_s15 + $0x70] sm:$0xff]  ;;  %s1419_s28 = smov 64   ;;  %vm977_vm14 = vcmask 785408  }
  0x17   :  { %1279 = vmatpush.msra.mxu3 %v1571_v6  ;;  %v1645_v32 = vld [vmem:[%s2210_s15 + $0x78] sm:$0xff]  ;;  %v1656_v34 = vld [vmem:[%s2210_s15 + $0x68] sm:$0xff]  ;;  %v1662_v35 = vld [vmem:[%s2210_s15 + $0x60] sm:$0xff]  ;;  %s2240_s5 = sld [smem:[#allocation15_spill]]  ;;  %s1218_s30 = sshll.u32 %s2218_s23, 4  ;;  %s1219_s30 = int_to_ptr.hbm [resolvable:$true] %s1218_s30 }
  0x18   :  { %229 = vmatpush.msra.mxu2 %v1645_v32  ;;  %v1668_v36 = vld [vmem:[%s2210_s15 + $0x58] sm:$0xff]  ;;  %v1674_v39 = vld [vmem:[%s2210_s15 + $0x50] sm:$0xff]  ;;  %v1680_v40 = vld [vmem:[%s2210_s15 + $0x48] sm:$0xff] }
  0x19   :  { %1280 = vmatpush.msra.mxu3 %v1576_v7  ;;  %v1686_v41 = vld [vmem:[%s2210_s15 + $0x40] sm:$0xff]  ;;  %v1692_v42 = vld [vmem:[%s2210_s15 + $0x38] sm:$0xff]  ;;  %v1699_v44 = vld [vmem:[%s2210_s15 + $0x30] sm:$0xff] }
  0x1a   :  { %v1594_v11 = vld [vmem:[%s2237_s7 + $0x8] sm:$0xff]  ;;  %230 = vmatpush.msra.mxu2 %v1650_v33  ;;  %v1711_v47 = vld [vmem:[%s2210_s15 + $0x20] sm:$0xff]  ;;  %v1717_v48 = vld [vmem:[%s2210_s15 + $0x18] sm:$0xff] }
  0x1b   :  { %1240 = vmatmul.msk.f32.gmra.mxu0 %vm79_vm0, %v76_v3  ;;  %1281 = vmatpush.msra.mxu3 %v1582_v8  ;;  %v418_v13 = vld [vmem:[%s2238_s3] sm:$0xff]  ;;  %v419_v17 = vld [vmem:[%s2238_s3 + $0x8] sm:$0xff]  ;;  %v420_v18 = vld [vmem:[%s2238_s3 + $0x10] sm:$0xff] }
  0x1c   :  { %v421_v19 = vld [vmem:[%s2238_s3 + $0x18] sm:$0xff]  ;;  %v132_v24 = vld [vmem:[%s2239_s27] sm:$0xff]  ;;  %v133_v26 = vld [vmem:[%s2239_s27 + $0x8] sm:$0xff]  ;;  %231 = vmatpush.msra.mxu2 %v1656_v34 }
  0x1d   :  { %1282 = vmatpush.msra.mxu3 %v1588_v9  ;;  %v134_v27 = vld [vmem:[%s2239_s27 + $0x10] sm:$0xff]  ;;  %v135_v28 = vld [vmem:[%s2239_s27 + $0x18] sm:$0xff]  ;;  %v1705_v46 = vld [vmem:[%s2210_s15 + $0x28] sm:$0xff]  ;;  %s2241_s27 = sld [smem:[#allocation12_spill]] }
  0x1e   :  { %1249 = vmatmul.msk.f32.vlgmr.msra.gmra.mxu3 %vm129_vm1, %v1594_v11  ;;  %232 = vmatpush.msra.mxu2 %v1662_v35  ;;  %v1724_v50 = vld [vmem:[%s2210_s15 + $0x10] sm:$0xff]  ;;  %v1730_v51 = vld [vmem:[%s2210_s15 + $0x8] sm:$0xff]  ;;  %v1738_v54 = vld [vmem:[%s2210_s15] sm:$0xff]  ;;  %s1425_s15 = smov [#allocation2]  }
  0x1f   :  { %448 = vmatpush.msrb.mxu3 %v74_v0  ;;  %v188_v55 = vld [vmem:[%s2237_s7] sm:$0xff]  ;;  %v474_v2 = vld [vmem:[%s2240_s5 + $0x8] sm:$0xff]  ;;  %v475_v3 = vld [vmem:[%s2240_s5 + $0x10] sm:$0xff]  ;;  %s2242_s7 = sld [smem:[#allocation16_spill]] }
  0x20   :  { %233 = vmatpush.msra.mxu2 %v1668_v36  ;;  %v473_v0 = vld [vmem:[%s2240_s5] sm:$0xff] }
  0x21   :  { %449 = vmatpush.msrb.mxu3 %v73_v1 }
  0x22   :  { %234 = vmatpush.msra.mxu2 %v1674_v39 }
  0x23   :  { %1241 = vmatmul.msk.f32.gmra.mxu0 %vm79_vm0, %v77_v4  ;;  %v476_v4 = vld [vmem:[%s2240_s5 + $0x18] sm:$0xff] }
  0x24   :  { %235 = vmatpush.msra.mxu2 %v1680_v40 }
  0x26   :  { %1250 = vmatmul.msk.f32.vlgmr.msrb.gmra.mxu3 %vm79_vm0, %v418_v13  ;;  %236 = vmatpush.msra.mxu2 %v1686_v41 }
  0x28   :  { %237 = vmatpush.msra.mxu2 %v1692_v42 }
  0x2a   :  { %238 = vmatpush.msra.mxu2 %v1699_v44 }
  0x2b   :  { %1242 = vmatmul.msk.f32.gmra.mxu0 %vm79_vm0, %v78_v5 }
  0x2c   :  { %239 = vmatpush.msra.mxu2 %v1705_v46 }
  0x2e   :  { %1251 = vmatmul.msk.f32.gmra.mxu3 %vm79_vm0, %v419_v17  ;;  %240 = vmatpush.msra.mxu2 %v1711_v47  ;;  %v341_v17 = vld [vmem:[%s2213_s18 + $0x78] sm:$0xff] }
  0x2f   :  { %342 = vmatpush.msrb.mxu0 %v341_v17 }
  0x30   :  { %241 = vmatpush.msra.mxu2 %v1717_v48 }
  0x32   :  { %242 = vmatpush.msra.mxu2 %v1724_v50 }
  0x34   :  { %243 = vmatpush.msra.mxu2 %v1730_v51 }
  0x36   :  { %1252 = vmatmul.msk.f32.gmra.mxu3 %vm79_vm0, %v420_v18  ;;  %244 = vmatpush.msra.mxu2 %v1738_v54 }
  0x3e   :  { %1253 = vmatmul.msk.f32.gmra.mxu3 %vm79_vm0, %v421_v19 }
  0x90   :  { %v109_v10 = vpop.f32.mrf.mxu0 }
  0x98   :  { %v112_v12 = vpop.f32.mrf.mxu0 }
  0xa0   :  { %v115_v14 = vpop.f32.mrf.mxu0 }
  0xa1   :  { %v1638_v29 = vpop.f32.mrf.mxu3 }
  0xa8   :  { %v118_v15 = vpop.f32.mrf.mxu0 }
  0xa9   :  { %v1291_v16 = vpack.i.bf16 %v115_v14, %v118_v15  ;;  %v1640_v30 = vpop.f32.mrf.mxu3  ;;  %v194_v14 = vlaneseq }
  0xab   :  { %1292 = vrot.lane.b32.xlu0 %v1291_v16, %s1418_s0  ;;  %v195_v18 = vshrl.u32 %v194_v14, 7 }
  0xb1   :  { %v454_v37 = vpop.f32.mrf.mxu3 }
  0xb9   :  { %v457_v45 = vpop.f32.mrf.mxu3 }
  0xc1   :  { %v460_v52 = vpop.f32.mrf.mxu3 }
  0xc2   :  { %v1296_v53 = vpack.i.bf16 %v457_v45, %v460_v52 }
 0x11d   :  { %v1293_v20 = vpop.permute.xlu0 %1292 }
 0x11e   :  { %v1295_v21 = vunpack.i.h.bf16 %v1293_v20  ;;  %v1294_v22 = vunpack.i.l.bf16 %v1293_v20 }
 0x120   :  { %v131_v23 = vsel %vm129_vm1, %v112_v12, %v1294_v22  ;;  %v130_v25 = vsel %vm129_vm1, %v109_v10, %v1295_v21  ;;  %v340_v21 = vld [vmem:[%s2213_s18 + $0x70] sm:$0xff] }
 0x121   :  { %162 = vmatpush.msra.mxu1 %v131_v23  ;;  %343 = vmatpush.msrb.mxu0 %v340_v21  ;;  %v339_v23 = vld [vmem:[%s2213_s18 + $0x68] sm:$0xff] }
 0x123   :  { %163 = vmatpush.msra.mxu1 %v130_v25  ;;  %344 = vmatpush.msrb.mxu0 %v339_v23 }
 0x124   :  { %1243 = vmatmul.msk.f32.vlgmr.msra.gmra.mxu1 %vm79_vm0, %v132_v24  ;;  %v1779_v24 = vadd.s32 8, %v195_v18 }
 0x125   :  { %264 = vmatpush.msrb.mxu1 %v1571_v6 }
 0x126   :  { %vm198_vm3 = vcmp.lt.s32.totalorder %v1779_v24, 10  ;;  %vm675_vm10 = vcmp.lt.s32.totalorder %v1779_v24, 12  ;;  %v936_v24 = vld [vmem:[%s2204_s9 + $0x18] sm:$0xff] }
 0x127   :  { %265 = vmatpush.msrb.mxu1 %v1576_v7 }
 0x129   :  { %266 = vmatpush.msrb.mxu1 %v1582_v8 }
 0x12b   :  { %267 = vmatpush.msrb.mxu1 %v1588_v9 }
 0x12c   :  { %1244 = vmatmul.msk.f32.gmra.mxu1 %vm79_vm0, %v133_v26  ;;  %v338_v26 = vld [vmem:[%s2213_s18 + $0x60] sm:$0xff] }
 0x12d   :  { %345 = vmatpush.msrb.mxu0 %v338_v26 }
 0x134   :  { %1245 = vmatmul.msk.f32.gmra.mxu1 %vm79_vm0, %v134_v27 }
 0x13c   :  { %1246 = vmatmul.msk.f32.gmra.mxu1 %vm79_vm0, %v135_v28  ;;  %v337_v28 = vld [vmem:[%s2213_s18 + $0x58] sm:$0xff] }
 0x13d   :  { %346 = vmatpush.msrb.mxu0 %v337_v28 }
 0x144   :  { %1248 = vmatmul.msk.f32.vlgmr.msrb.gmra.mxu1 %vm129_vm1, %v188_v55 }
 0x1a1   :  { %v165_v31 = vpop.f32.mrf.mxu1 }
 0x1a9   :  { %v168_v38 = vpop.f32.mrf.mxu1 }
 0x1b1   :  { %v171_v43 = vpop.f32.mrf.mxu1 }
 0x1b2   :  { %179 = vrot.lane.b32.xlu0 %v171_v43, %s1419_s28  ;;  %v1420_v43 = vmov 0.0  }
 0x1b3   :  { %v1797_v45 = vsel %vm198_vm3, 1.0, %v1420_v43 }
 0x1b9   :  { %v174_v49 = vpop.f32.mrf.mxu1 }
 0x1ba   :  { %181 = vrot.lane.b32.xlu1 %v174_v49, %s1419_s28 }
 0x1c1   :  { %v269_v10 = vpop.f32.mrf.mxu1 }
 0x1c2   :  { %1297 = vrot.lane.b32.xlu1 %v1296_v53, %s1418_s0  ;;  %v334_v53 = vld [vmem:[%s2213_s18 + $0x40] sm:$0xff] }
 0x224   :  { %v180_v56 = vpop.permute.xlu0 %179 }
 0x225   :  { %v186_v57 = vsel %vm185_vm2, %v165_v31, %v180_v56  ;;  %v336_v31 = vld [vmem:[%s2213_s18 + $0x50] sm:$0xff]  ;;  %v333_v56 = vld [vmem:[%s2213_s18 + $0x38] sm:$0xff] }
 0x226   :  { %245 = vmatmul.f32.vlgmr.msra.gmra.mxu2 %v186_v57  ;;  %347 = vmatpush.msrb.mxu0 %v336_v31 }
 0x22c   :  { %v182_v58 = vpop.permute.xlu1 %181 }
 0x22d   :  { %v187_v59 = vsel %vm185_vm2, %v168_v38, %v182_v58  ;;  %v335_v38 = vld [vmem:[%s2213_s18 + $0x48] sm:$0xff] }
 0x22e   :  { %248 = vmatmul.f32.gmra.mxu2 %v187_v59  ;;  %630 = vmatpush.msra.mxu3 %v187_v59 }
 0x22f   :  { %348 = vmatpush.msrb.mxu0 %v335_v38 }
 0x230   :  { %631 = vmatpush.msra.mxu3 %v186_v57 }
 0x231   :  { %349 = vmatpush.msrb.mxu0 %v334_v53 }
 0x232   :  { %819 = vmatpush.msrb.mxu3 %v341_v17 }
 0x233   :  { %350 = vmatpush.msrb.mxu0 %v333_v56 }
 0x234   :  { %v1298_v60 = vpop.permute.xlu1 %1297  ;;  %820 = vmatpush.msrb.mxu3 %v340_v21 }
 0x235   :  { %v1300_v61 = vunpack.i.h.bf16 %v1298_v60  ;;  %v1299_v62 = vunpack.i.l.bf16 %v1298_v60  ;;  %v332_v60 = vld [vmem:[%s2213_s18 + $0x30] sm:$0xff] }
 0x236   :  { %821 = vmatpush.msrb.mxu3 %v339_v23  ;;  %351 = vmatpush.msrb.mxu0 %v332_v60 }
 0x237   :  { %v472_v63 = vsel %vm129_vm1, %v454_v37, %v1299_v62  ;;  %v471_v1 = vsel %vm129_vm1, %v1640_v30, %v1300_v61  ;;  %v331_v62 = vld [vmem:[%s2213_s18 + $0x28] sm:$0xff] }
 0x238   :  { %503 = vmatpush.msra.mxu1 %v472_v63  ;;  %822 = vmatpush.msrb.mxu3 %v338_v26  ;;  %v1316_v26 = vld [vmem:[%s2211_s16] ss:$0 sm:$0xff] }
 0x239   :  { %352 = vmatpush.msrb.mxu0 %v331_v62 }
 0x23a   :  { %504 = vmatpush.msra.mxu1 %v471_v1  ;;  %823 = vmatpush.msrb.mxu3 %v337_v28 }
 0x23b   :  { %1254 = vmatmul.msk.f32.vlgmr.msra.gmra.mxu1 %vm79_vm0, %v473_v0  ;;  %v330_v0 = vld [vmem:[%s2213_s18 + $0x20] sm:$0xff] }
 0x23c   :  { %659 = vmatpush.msrb.mxu1 %v1594_v11  ;;  %824 = vmatpush.msrb.mxu3 %v336_v31  ;;  %v1317_v31 = vld [vmem:[%s2212_s17] ss:$0 sm:$0xff] }
 0x23d   :  { %353 = vmatpush.msrb.mxu0 %v330_v0 }
 0x23e   :  { %660 = vmatpush.msrb.mxu1 %v188_v55  ;;  %825 = vmatpush.msrb.mxu3 %v335_v38 }
 0x240   :  { %826 = vmatpush.msrb.mxu3 %v334_v53 }
 0x242   :  { %827 = vmatpush.msrb.mxu3 %v333_v56 }
 0x243   :  { %1255 = vmatmul.msk.f32.gmra.mxu1 %vm79_vm0, %v474_v2  ;;  %v329_v2 = vld [vmem:[%s2213_s18 + $0x18] sm:$0xff] }
 0x244   :  { %828 = vmatpush.msrb.mxu3 %v332_v60  ;;  %354 = vmatpush.msrb.mxu0 %v329_v2  ;;  %v530_v60 = vld [vmem:[%s2242_s7] sm:$0xff] }
 0x246   :  { %829 = vmatpush.msrb.mxu3 %v331_v62  ;;  %v531_v62 = vld [vmem:[%s2242_s7 + $0x8] sm:$0xff] }
 0x248   :  { %830 = vmatpush.msrb.mxu3 %v330_v0 }
 0x24a   :  { %831 = vmatpush.msrb.mxu3 %v329_v2  ;;  %v533_v2 = vld [vmem:[%s2242_s7 + $0x18] sm:$0xff] }
 0x24b   :  { %1256 = vmatmul.msk.f32.gmra.mxu1 %vm79_vm0, %v475_v3  ;;  %v328_v3 = vld [vmem:[%s2213_s18 + $0x10] sm:$0xff] }
 0x24c   :  { %355 = vmatpush.msrb.mxu0 %v328_v3  ;;  %832 = vmatpush.msrb.mxu3 %v328_v3 }
 0x253   :  { %1257 = vmatmul.msk.f32.gmra.mxu1 %vm79_vm0, %v476_v4 }
 0x2a9   :  { %v246_v5 = vpop.f32.mrf.mxu2 }
 0x2aa   :  { %v270_v12 = vadd.f32 %v269_v10, %v246_v5  ;;  %v327_v10 = vld [vmem:[%s2213_s18 + $0x8] sm:$0xff] }
 0x2ab   :  { %356 = vmatpush.msrb.mxu0 %v327_v10  ;;  %833 = vmatpush.msrb.mxu3 %v327_v10 }
 0x2b1   :  { %v249_v11 = vpop.f32.mrf.mxu2 }
 0x2b2   :  { %v273_v13 = vadd.f32 %v1638_v29, %v249_v11 }
 0x2b4   :  { %v277_v15 = vadd.f32 %v273_v13, %v270_v12 }
 0x2b6   :  { %v278_v16 = vrot.slane %v277_v15, 4 }
 0x2b8   :  { %v279_v19 = vadd.f32 %v278_v16, %v277_v15  ;;  %v1771_v20 = vpop.f32.mrf.mxu1 }
 0x2ba   :  { %v280_v22 = vrot.slane %v279_v19, 2 }
 0x2bc   :  { %v281_v25 = vadd.f32 %v280_v22, %v279_v19 }
 0x2be   :  { %v282_v27 = vrot.slane %v281_v25, 1 }
 0x2c0   :  { %v283_v29 = vadd.f32 %v282_v27, %v281_v25  ;;  %v1788_v30 = vpop.f32.mrf.mxu1 }
 0x2c2   :  { %v284_v37 = vmul.f32 0.1, %v283_v29 }
 0x2c4   :  { %v285_v49 = vsub.f32 %v270_v12, %v284_v37  ;;  %v286_v52 = vsub.f32 %v273_v13, %v284_v37  ;;  %v326_v13 = vld [vmem:[%s2213_s18] sm:$0xff] }
 0x2c5   :  { %357 = vmatpush.msrb.mxu0 %v326_v13  ;;  %834 = vmatpush.msrb.mxu3 %v326_v13 }
 0x2c6   :  { %v288_v55 = vmul.f32 %v1797_v45, %v286_v52  ;;  %v289_v57 = vmul.f32 %v285_v49, %v285_v49 }
 0x2c8   :  { %v290_v58 = vmul.f32 %v288_v55, %v288_v55  ;;  %v512_v59 = vpop.f32.mrf.mxu1 }
 0x2ca   :  { %v291_v61 = vadd.f32 %v290_v58, %v289_v57 }
 0x2cc   :  { %v292_v63 = vrot.slane %v291_v61, 4 }
 0x2ce   :  { %v293_v1 = vadd.f32 %v292_v63, %v291_v61  ;;  %v191_v61 = vld [vmem:[%s2241_s27 + $0x8] sm:$0xff] }
 0x2d0   :  { %v294_v4 = vrot.slane %v293_v1, 2  ;;  %v515_v5 = vpop.f32.mrf.mxu1 }
 0x2d1   :  { %v1301_v11 = vpack.i.bf16 %v512_v59, %v515_v5  ;;  %v190_v59 = vld [vmem:[%s2241_s27] sm:$0xff] }
 0x2d2   :  { %v295_v12 = vadd.f32 %v294_v4, %v293_v1  ;;  %1266 = vmatmul.msk.f32.vlgmr.msra.gmra.mxu3 %vm79_vm0, %v190_v59  ;;  %1270 = vmatmul.msk.f32.vlgmr.msrb.gmra.mxu1 %vm79_vm0, %v190_v59 }
 0x2d3   :  { %1302 = vrot.lane.b32.xlu2 %v1301_v11, %s1419_s28 }
 0x2d4   :  { %v296_v14 = vrot.slane %v295_v12, 1 }
 0x2d6   :  { %v297_v15 = vadd.f32 %v296_v14, %v295_v12 }
 0x2d8   :  { %v298_v16 = vmul.f32 0.1, %v297_v15 }
 0x2da   :  { %v299_v17 = vadd.f32 1e-05, %v298_v16  ;;  %1267 = vmatmul.msk.f32.gmra.mxu3 %vm79_vm0, %v191_v61  ;;  %1271 = vmatmul.msk.f32.gmra.mxu1 %vm79_vm0, %v191_v61 }
 0x2dc   :  { %1328 = vrsqrt.f32 %v299_v17  ;;  %vm306_vm5 = vweird.f32 %v299_v17 }
 0x2e2   :  { %v1329_v18 = vpop.eup %1328 }
 0x2e3   :  { %v301_v19 = vmul.f32 %v1329_v18, %v299_v17  ;;  %vm307_vm4 = vweird.f32 %v1329_v18 }
 0x2e4   :  { %vm308_vm6 = vmor %vm306_vm5, %vm307_vm4 }
 0x2e5   :  { %v302_v21 = vmul.f32 %v1329_v18, %v301_v19 }
 0x2e7   :  { %v303_v22 = vmul.f32 0.5, %v302_v21 }
 0x2e9   :  { %v304_v23 = vsub.f32 1.5, %v303_v22 }
 0x2eb   :  { %v305_v25 = vmul.f32 %v1329_v18, %v304_v23 }
 0x2ed   :  { %v309_v27 = vsel %vm308_vm6, %v1329_v18, %v305_v25 }
 0x2ee   :  { %v311_v28 = vmul.f32 %v309_v27, %v288_v55  ;;  %v310_v29 = vmul.f32 %v309_v27, %v285_v49  ;;  %v529_v49 = vld [vmem:[%s2203_s8 + $0x8] sm:$0xff]  ;;  %v528_v55 = vld [vmem:[%s2203_s8] sm:$0xff] }
 0x2ef   :  { %589 = vmatpush.msra.mxu0 %v529_v49  ;;  %v1318_v27 = vld [vmem:[%s2214_s19] ss:$0 sm:$0xff] }
 0x2f0   :  { %v315_v37 = vmul.f32 %v1316_v26, %v310_v29  ;;  %v316_v38 = vmul.f32 %v1316_v26, %v311_v28 }
 0x2f1   :  { %590 = vmatpush.msra.mxu0 %v528_v55 }
 0x2f2   :  { %v320_v52 = vadd.f32 %v1317_v31, %v315_v37  ;;  %v321_v56 = vadd.f32 %v1317_v31, %v316_v38  ;;  %v1319_v37 = vld [vmem:[%s2215_s20] ss:$0 sm:$0xff] }
 0x2f4   :  { %v322_v53 = vmax.f32 %v320_v52, 0.0  ;;  %v323_v57 = vmax.f32 %v321_v56, 0.0 }
 0x2f6   :  { %358 = vmatmul.f32.vlgmr.msrb.gmra.mxu0 %v322_v53  ;;  %v325_v58 = vmul.f32 %v1797_v45, %v323_v57 }
 0x2f7   :  { %741 = vmatpush.msrb.mxu0 %v1571_v6  ;;  %v192_v6 = vld [vmem:[%s2241_s27 + $0x10] sm:$0xff] }
 0x2f8   :  { %1268 = vmatmul.msk.f32.gmra.mxu3 %vm79_vm0, %v192_v6  ;;  %1272 = vmatmul.msk.f32.gmra.mxu1 %vm79_vm0, %v192_v6 }
 0x2f9   :  { %742 = vmatpush.msrb.mxu0 %v1576_v7  ;;  %v532_v7 = vld [vmem:[%s2242_s7 + $0x10] sm:$0xff]  ;;  %s1190_s7 = sshll.u32 %s1425_s15, 4  ;;  %s1191_s7 = int_to_ptr.vmem [resolvable:$true] %s1190_s7 }
 0x2fb   :  { %743 = vmatpush.msrb.mxu0 %v1582_v8  ;;  %v193_v8 = vld [vmem:[%s2241_s27 + $0x18] sm:$0xff] }
 0x2fd   :  { %744 = vmatpush.msrb.mxu0 %v1588_v9 }
 0x2fe   :  { %361 = vmatmul.f32.gmra.mxu0 %v325_v58 }
 0x300   :  { %1269 = vmatmul.msk.f32.gmra.mxu3 %vm79_vm0, %v193_v8  ;;  %1273 = vmatmul.msk.f32.gmra.mxu1 %vm79_vm0, %v193_v8 }
 0x306   :  { %1262 = vmatmul.msk.f32.vlgmr.msra.gmra.mxu0 %vm79_vm0, %v530_v60 }
 0x30e   :  { %1263 = vmatmul.msk.f32.gmra.mxu0 %vm79_vm0, %v531_v62 }
 0x316   :  { %1264 = vmatmul.msk.f32.gmra.mxu0 %vm79_vm0, %v532_v7 }
 0x31e   :  { %1265 = vmatmul.msk.f32.gmra.mxu0 %vm79_vm0, %v533_v2 }
 0x326   :  { %1275 = vmatmul.msk.f32.vlgmr.msrb.gmra.mxu0 %vm129_vm1, %v528_v55 }
 0x32d   :  { %v1303_v9 = vpop.permute.xlu2 %1302 }
 0x32e   :  { %v1305_v63 = vunpack.i.h.bf16 %v1303_v9  ;;  %v1304_v0 = vunpack.i.l.bf16 %v1303_v9  ;;  %1276 = vmatmul.msk.f32.gmra.mxu0 %vm129_vm1, %v529_v49 }
 0x330   :  { %v527_v1 = vsel %vm185_vm2, %v1788_v30, %v1304_v0  ;;  %v526_v3 = vsel %vm185_vm2, %v1771_v20, %v1305_v63 }
 0x331   :  { %560 = vmatpush.msrb.mxu2 %v527_v1 }
 0x333   :  { %561 = vmatpush.msrb.mxu2 %v526_v3 }
 0x334   :  { %1258 = vmatmul.msk.f32.vlgmr.msrb.gmra.mxu2 %vm79_vm0, %v530_v60 }
 0x335   :  { %706 = vmatpush.msra.mxu2 %v1645_v32 }
 0x337   :  { %707 = vmatpush.msra.mxu2 %v1650_v33 }
 0x339   :  { %708 = vmatpush.msra.mxu2 %v1656_v34 }
 0x33b   :  { %709 = vmatpush.msra.mxu2 %v1662_v35 }
 0x33c   :  { %1259 = vmatmul.msk.f32.gmra.mxu2 %vm79_vm0, %v531_v62 }
 0x33d   :  { %710 = vmatpush.msra.mxu2 %v1668_v36 }
 0x33f   :  { %711 = vmatpush.msra.mxu2 %v1674_v39 }
 0x341   :  { %712 = vmatpush.msra.mxu2 %v1680_v40 }
 0x343   :  { %713 = vmatpush.msra.mxu2 %v1686_v41 }
 0x344   :  { %1260 = vmatmul.msk.f32.gmra.mxu2 %vm79_vm0, %v532_v7 }
 0x345   :  { %714 = vmatpush.msra.mxu2 %v1692_v42 }
 0x347   :  { %715 = vmatpush.msra.mxu2 %v1699_v44 }
 0x349   :  { %716 = vmatpush.msra.mxu2 %v1705_v46 }
 0x34b   :  { %717 = vmatpush.msra.mxu2 %v1711_v47 }
 0x34c   :  { %1261 = vmatmul.msk.f32.gmra.mxu2 %vm79_vm0, %v533_v2 }
 0x34d   :  { %718 = vmatpush.msra.mxu2 %v1717_v48 }
 0x34f   :  { %719 = vmatpush.msra.mxu2 %v1724_v50  ;;  %v662_v15 = vpop.f32.mrf.mxu1 }
 0x351   :  { %720 = vmatpush.msra.mxu2 %v1730_v51 }
 0x353   :  { %721 = vmatpush.msra.mxu2 %v1738_v54 }
 0x354   :  { %722 = vmatmul.f32.vlgmr.msra.gmra.mxu2 %v526_v3 }
 0x355   :  { %v633_v21 = vpop.f32.mrf.mxu3 }
 0x357   :  { %v665_v25 = vpop.f32.mrf.mxu1 }
 0x35c   :  { %725 = vmatmul.f32.gmra.mxu2 %v527_v1 }
 0x35d   :  { %v636_v58 = vpop.f32.mrf.mxu3 }
 0x373   :  { %v359_v32 = vpop.f32.mrf.mxu0 }
 0x375   :  { %v668_v61 = vpop.f32.mrf.mxu1 }
 0x37b   :  { %v362_v33 = vpop.f32.mrf.mxu0  ;;  %v639_v2 = vpop.f32.mrf.mxu3 }
 0x37c   :  { %v367_v34 = vadd.f32 %v362_v33, %v359_v32 }
 0x37e   :  { %v368_v35 = vrot.slane %v367_v34, 4 }
 0x380   :  { %v369_v36 = vadd.f32 %v368_v35, %v367_v34 }
 0x382   :  { %v370_v39 = vrot.slane %v369_v36, 2 }
 0x383   :  { %v592_v14 = vpop.f32.mrf.mxu0 }
 0x384   :  { %v371_v40 = vadd.f32 %v370_v39, %v369_v36  ;;  %v663_v38 = vadd.f32 %v662_v15, %v592_v14  ;;  %v940_v15 = vld [vmem:[%s2204_s9 + $0x38] sm:$0xff] }
 0x386   :  { %v372_v41 = vrot.slane %v371_v40, 1 }
 0x388   :  { %v373_v42 = vadd.f32 %v372_v41, %v371_v40 }
 0x38a   :  { %v374_v44 = vmul.f32 0.1, %v373_v42  ;;  %v948_v42 = vld [vmem:[%s2204_s9 + $0x78] sm:$0xff] }
 0x38b   :  { %v595_v23 = vpop.f32.mrf.mxu0  ;;  %982 = vmatpush.msra.mxu1 %v948_v42  ;;  %v969_v42 = vld [vmem:[%s2204_s9 + $0x120] sm:$0xff] }
 0x38c   :  { %v375_v46 = vsub.f32 %v359_v32, %v374_v44  ;;  %v376_v47 = vsub.f32 %v362_v33, %v374_v44  ;;  %v666_v7 = vadd.f32 %v665_v25, %v595_v23  ;;  %v671_v32 = vpop.f32.mrf.mxu1  ;;  %v947_v44 = vld [vmem:[%s2204_s9 + $0x70] sm:$0xff]  ;;  %v1959_v23 = vsel %vm675_vm10, 1.0, %v1420_v43 }
 0x38d   :  { %983 = vmatpush.msra.mxu1 %v947_v44 }
 0x38e   :  { %v378_v48 = vmul.f32 %v1797_v45, %v376_v47  ;;  %v379_v50 = vmul.f32 %v375_v46, %v375_v46  ;;  %v946_v47 = vld [vmem:[%s2204_s9 + $0x68] sm:$0xff] }
 0x38f   :  { %984 = vmatpush.msra.mxu1 %v946_v47  ;;  %v968_v47 = vld [vmem:[%s2204_s9 + $0x118] sm:$0xff] }
 0x390   :  { %v380_v51 = vmul.f32 %v378_v48, %v378_v48 }
 0x392   :  { %v381_v20 = vadd.f32 %v380_v51, %v379_v50 }
 0x393   :  { %v598_v60 = vpop.f32.mrf.mxu0 }
 0x394   :  { %v382_v54 = vrot.slane %v381_v20, 4  ;;  %v669_v0 = vadd.f32 %v668_v61, %v598_v60  ;;  %v961_v61 = vld [vmem:[%s2204_s9 + $0xe0] sm:$0xff] }
 0x396   :  { %v383_v30 = vadd.f32 %v382_v54, %v381_v20  ;;  %v945_v20 = vld [vmem:[%s2204_s9 + $0x60] sm:$0xff] }
 0x397   :  { %985 = vmatpush.msra.mxu1 %v945_v20  ;;  %v967_v20 = vld [vmem:[%s2204_s9 + $0x110] sm:$0xff] }
 0x398   :  { %v384_v4 = vrot.slane %v383_v30, 2 }
 0x39a   :  { %v385_v5 = vadd.f32 %v384_v4, %v383_v30  ;;  %v944_v30 = vld [vmem:[%s2204_s9 + $0x58] sm:$0xff] }
 0x39b   :  { %v601_v3 = vpop.f32.mrf.mxu0  ;;  %986 = vmatpush.msra.mxu1 %v944_v30 }
 0x39c   :  { %v386_v10 = vrot.slane %v385_v5, 1  ;;  %v672_v35 = vadd.f32 %v671_v32, %v601_v3  ;;  %v973_v3 = vld [vmem:[%s2204_s9 + $0x140] sm:$0xff]  ;;  %v956_v32 = vld [vmem:[%s2204_s9 + $0xb8] sm:$0xff] }
 0x39e   :  { %v387_v11 = vadd.f32 %v386_v10, %v385_v5  ;;  %v943_v5 = vld [vmem:[%s2204_s9 + $0x50] sm:$0xff] }
 0x39f   :  { %987 = vmatpush.msra.mxu1 %v943_v5  ;;  %v966_v5 = vld [vmem:[%s2204_s9 + $0x108] sm:$0xff] }
 0x3a0   :  { %v388_v12 = vmul.f32 0.1, %v387_v11  ;;  %v942_v11 = vld [vmem:[%s2204_s9 + $0x48] sm:$0xff] }
 0x3a1   :  { %988 = vmatpush.msra.mxu1 %v942_v11  ;;  %v1340_v11 = vld [vmem:[%s2235_s24] sm:$0xff] }
 0x3a2   :  { %v389_v13 = vadd.f32 1e-05, %v388_v12 }
 0x3a3   :  { %v746_v40 = vpop.f32.mrf.mxu0 }
 0x3a4   :  { %1330 = vrsqrt.f32 %v389_v13  ;;  %vm396_vm8 = vweird.f32 %v389_v13 }
 0x3aa   :  { %v1331_v16 = vpop.eup %1330 }
 0x3ab   :  { %v391_v17 = vmul.f32 %v1331_v16, %v389_v13  ;;  %vm397_vm7 = vweird.f32 %v1331_v16  ;;  %v941_v13 = vld [vmem:[%s2204_s9 + $0x40] sm:$0xff] }
 0x3ac   :  { %vm398_vm9 = vmor %vm396_vm8, %vm397_vm7  ;;  %989 = vmatpush.msra.mxu1 %v941_v13  ;;  %v1320_v13 = vld [vmem:[%s2211_s16] ss:$0 sm:$0xff]  ;;  %s1205_s16 = sshll.u32 %s2217_s22, 4  ;;  %s1206_s16 = int_to_ptr.hbm [resolvable:$true] %s1205_s16 }
 0x3ad   :  { %v392_v18 = vmul.f32 %v1331_v16, %v391_v17  ;;  %v939_v17 = vld [vmem:[%s2204_s9 + $0x30] sm:$0xff] }
 0x3ae   :  { %990 = vmatpush.msra.mxu1 %v940_v15 }
 0x3af   :  { %v393_v19 = vmul.f32 0.5, %v392_v18 }
 0x3b0   :  { %991 = vmatpush.msra.mxu1 %v939_v17  ;;  %v1321_v17 = vld [vmem:[%s2212_s17] ss:$0 sm:$0xff]  ;;  %s1422_s17 = smov 128  }
 0x3b1   :  { %v394_v22 = vsub.f32 1.5, %v393_v19  ;;  %v938_v19 = vld [vmem:[%s2204_s9 + $0x28] sm:$0xff] }
 0x3b2   :  { %992 = vmatpush.msra.mxu1 %v938_v19  ;;  %v965_v19 = vld [vmem:[%s2204_s9 + $0x100] sm:$0xff] }
 0x3b3   :  { %v395_v26 = vmul.f32 %v1331_v16, %v394_v22  ;;  %v937_v22 = vld [vmem:[%s2204_s9 + $0x20] sm:$0xff] }
 0x3b4   :  { %993 = vmatpush.msra.mxu1 %v937_v22 }
 0x3b5   :  { %v399_v28 = vsel %vm398_vm9, %v1331_v16, %v395_v26 }
 0x3b6   :  { %v400_v29 = vmul.f32 %v399_v28, %v375_v46  ;;  %v401_v31 = vmul.f32 %v399_v28, %v378_v48  ;;  %v749_v46 = vpop.f32.mrf.mxu0  ;;  %994 = vmatpush.msra.mxu1 %v936_v24  ;;  %v935_v28 = vld [vmem:[%s2204_s9 + $0x10] sm:$0xff] }
 0x3b7   :  { %v563_v52 = vpop.f32.mrf.mxu2 }
 0x3b8   :  { %v405_v53 = vmul.f32 %v1318_v27, %v400_v29  ;;  %v406_v56 = vmul.f32 %v1318_v27, %v401_v31  ;;  %v634_v57 = vadd.f32 %v633_v21, %v563_v52  ;;  %995 = vmatpush.msra.mxu1 %v935_v28  ;;  %v934_v31 = vld [vmem:[%s2204_s9 + $0x8] sm:$0xff] }
 0x3ba   :  { %v410_v59 = vadd.f32 %v1319_v37, %v405_v53  ;;  %v411_v49 = vadd.f32 %v1319_v37, %v406_v56  ;;  %v1306_v55 = vpack.i.bf16 %v663_v38, %v634_v57  ;;  %996 = vmatpush.msra.mxu1 %v934_v31  ;;  %v933_v38 = vld [vmem:[%s2204_s9] sm:$0xff]  ;;  %v964_v56 = vld [vmem:[%s2204_s9 + $0xf8] sm:$0xff]  ;;  %v963_v57 = vld [vmem:[%s2204_s9 + $0xf0] sm:$0xff] }
 0x3bb   :  { %1005 = vmatpush.msrb.mxu2 %v964_v56 }
 0x3bc   :  { %v413_v62 = vmax.f32 %v411_v49, 0.0  ;;  %1307 = vrot.lane.b32.xlu2 %v1306_v55, %s1418_s0  ;;  %v412_v6 = vmax.f32 %v410_v59, 0.0  ;;  %997 = vmatpush.msra.mxu1 %v933_v38  ;;  %v962_v59 = vld [vmem:[%s2204_s9 + $0xe8] sm:$0xff] }
 0x3bd   :  { %1006 = vmatpush.msrb.mxu2 %v963_v57 }
 0x3be   :  { %v415_v8 = vmul.f32 %v1797_v45, %v413_v62  ;;  %416 = vst [vmem:[#allocation4] sm:$0xff] %v412_v6  ;;  %v642_v45 = vpop.f32.mrf.mxu3  ;;  %v960_v62 = vld [vmem:[%s2204_s9 + $0xd8] sm:$0xff] }
 0x3bf   :  { %v566_v9 = vpop.f32.mrf.mxu2  ;;  %1007 = vmatpush.msrb.mxu2 %v962_v59  ;;  %v976_v6 = vld [vmem:[%s2204_s9 + $0x158] sm:$0xff] }
 0x3c0   :  { %v637_v63 = vadd.f32 %v636_v58, %v566_v9  ;;  %417 = vst [vmem:[#allocation4 + $0x8] sm:$0xff] %v415_v8  ;;  %1032 = vmatpush.msra.mxu0 %v976_v6  ;;  %v959_v9 = vld [vmem:[%s2204_s9 + $0xd0] sm:$0xff] }
 0x3c1   :  { %1008 = vmatpush.msrb.mxu2 %v961_v61 }
 0x3c2   :  { %v1311_v1 = vpack.i.bf16 %v666_v7, %v637_v63  ;;  %v975_v7 = vld [vmem:[%s2204_s9 + $0x150] sm:$0xff]  ;;  %v974_v63 = vld [vmem:[%s2204_s9 + $0x148] sm:$0xff] }
 0x3c3   :  { %1009 = vmatpush.msrb.mxu2 %v960_v62  ;;  %1033 = vmatpush.msra.mxu0 %v975_v7 }
 0x3c4   :  { %1312 = vrot.lane.b32.xlu1 %v1311_v1, %s1418_s0  ;;  %919 = vrot.lane.b32.xlu2 %v669_v0, %s1419_s28  ;;  %v958_v1 = vld [vmem:[%s2204_s9 + $0xc8] sm:$0xff]  ;;  %s1192_s0 = sshll.u32 %s2216_s21, 4  ;;  %s1193_s0 = int_to_ptr.hbm [resolvable:$true] %s1192_s0 }
 0x3c5   :  { %1010 = vmatpush.msrb.mxu2 %v959_v9  ;;  %1034 = vmatpush.msra.mxu0 %v974_v63 }
 0x3c7   :  { %v569_v33 = vpop.f32.mrf.mxu2  ;;  %1011 = vmatpush.msrb.mxu2 %v958_v1  ;;  %1035 = vmatpush.msra.mxu0 %v973_v3 }
 0x3c8   :  { %v640_v34 = vadd.f32 %v639_v2, %v569_v33  ;;  %v957_v2 = vld [vmem:[%s2204_s9 + $0xc0] sm:$0xff]  ;;  %v972_v33 = vld [vmem:[%s2204_s9 + $0x138] sm:$0xff] }
 0x3c9   :  { %1012 = vmatpush.msrb.mxu2 %v957_v2  ;;  %1036 = vmatpush.msra.mxu0 %v972_v33 }
 0x3ca   :  { %917 = vrot.lane.b32.xlu0 %v640_v34, %s1419_s28  ;;  %v955_v34 = vld [vmem:[%s2204_s9 + $0xb0] sm:$0xff] }
 0x3cb   :  { %1013 = vmatpush.msrb.mxu2 %v956_v32 }
 0x3cc   :  { %923 = vrot.lane.b32.xlu1 %v672_v35, %s1419_s28  ;;  %v971_v35 = vld [vmem:[%s2204_s9 + $0x130] sm:$0xff] }
 0x3cd   :  { %1014 = vmatpush.msrb.mxu2 %v955_v34  ;;  %1037 = vmatpush.msra.mxu0 %v971_v35 }
 0x3cf   :  { %v572_v36 = vpop.f32.mrf.mxu2 }
 0x3d0   :  { %v643_v39 = vadd.f32 %v642_v45, %v572_v36  ;;  %v954_v36 = vld [vmem:[%s2204_s9 + $0xa8] sm:$0xff] }
 0x3d1   :  { %1015 = vmatpush.msrb.mxu2 %v954_v36 }
 0x3d2   :  { %921 = vrot.lane.b32.xlu0 %v643_v39, %s1419_s28  ;;  %v970_v39 = vld [vmem:[%s2204_s9 + $0x128] sm:$0xff]  ;;  %s1421_s28 = smov [#allocation4]  }
 0x3d3   :  { %1038 = vmatpush.msra.mxu0 %v970_v39  ;;  %s1203_s6 = sshll.u32 %s1421_s28, 4  ;;  %s1204_s6 = int_to_ptr.vmem [resolvable:$true] %s1203_s6 }
 0x3d5   :  { %1039 = vmatpush.msra.mxu0 %v969_v42 }
 0x3d7   :  { %v723_v41 = vpop.f32.mrf.mxu2  ;;  %1040 = vmatpush.msra.mxu0 %v968_v47 }
 0x3d8   :  { %v747_v50 = vadd.f32 %v746_v40, %v723_v41  ;;  %v953_v41 = vld [vmem:[%s2204_s9 + $0xa0] sm:$0xff] }
 0x3d9   :  { %1016 = vmatpush.msrb.mxu2 %v953_v41  ;;  %1041 = vmatpush.msra.mxu0 %v967_v20 }
 0x3db   :  { %1042 = vmatpush.msra.mxu0 %v966_v5 }
 0x3dd   :  { %1043 = vmatpush.msra.mxu0 %v965_v19 }
 0x3df   :  { %v726_v48 = vpop.f32.mrf.mxu2 }
 0x3e0   :  { %v750_v51 = vadd.f32 %v749_v46, %v726_v48  ;;  %v952_v46 = vld [vmem:[%s2204_s9 + $0x98] sm:$0xff] }
 0x3e1   :  { %1017 = vmatpush.msrb.mxu2 %v952_v46 }
 0x3e2   :  { %v754_v54 = vadd.f32 %v750_v51, %v747_v50 }
 0x3e4   :  { %v755_v4 = vrot.slane %v754_v54, 4 }
 0x3e6   :  { %v756_v10 = vadd.f32 %v755_v4, %v754_v54  ;;  %v950_v4 = vld [vmem:[%s2204_s9 + $0x88] sm:$0xff] }
 0x3e8   :  { %v757_v12 = vrot.slane %v756_v10, 2 }
 0x3ea   :  { %v758_v14 = vadd.f32 %v757_v12, %v756_v10 }
 0x3ec   :  { %v759_v16 = vrot.slane %v758_v14, 1 }
 0x3ee   :  { %v760_v18 = vadd.f32 %v759_v16, %v758_v14 }
 0x3f0   :  { %v761_v21 = vmul.f32 0.083333336, %v760_v18  ;;  %v949_v18 = vld [vmem:[%s2204_s9 + $0x80] sm:$0xff] }
 0x3f2   :  { %v1961_v25 = vsub.f32 %v747_v50, %v761_v21  ;;  %v763_v26 = vsub.f32 %v750_v51, %v761_v21  ;;  %v951_v51 = vld [vmem:[%s2204_s9 + $0x90] sm:$0xff]  ;;  %s1424_s9 = smov [#allocation6]  }
 0x3f3   :  { %1018 = vmatpush.msrb.mxu2 %v951_v51 }
 0x3f4   :  { %v1967_v27 = vmul.f32 %v1959_v23, %v763_v26  ;;  %v766_v43 = vmul.f32 %v1961_v25, %v1961_v25 }
 0x3f5   :  { %1019 = vmatpush.msrb.mxu2 %v950_v4 }
 0x3f6   :  { %v767_v29 = vmul.f32 %v1967_v27, %v1967_v27 }
 0x3f7   :  { %1020 = vmatpush.msrb.mxu2 %v949_v18 }
 0x3f8   :  { %v768_v37 = vadd.f32 %v767_v29, %v766_v43 }
 0x3fa   :  { %v769_v52 = vrot.slane %v768_v37, 4 }
 0x3fc   :  { %v770_v53 = vadd.f32 %v769_v52, %v768_v37  ;;  %v1341_v37 = vld [vmem:[%s2235_s24 + $0x8] sm:$0xff]  ;;  %s1216_s24 = sshll.u32 %s1424_s9, 4  ;;  %s1217_s24 = int_to_ptr.vmem [resolvable:$true] %s1216_s24 }
 0x3fe   :  { %v771_v58 = vrot.slane %v770_v53, 2 }
 0x400   :  { %v772_v49 = vadd.f32 %v771_v58, %v770_v53 }
 0x402   :  { %v773_v55 = vrot.slane %v772_v49, 1 }
 0x404   :  { %v774_v60 = vadd.f32 %v773_v55, %v772_v49 }
 0x406   :  { %v775_v8 = vmul.f32 0.083333336, %v774_v60 }
 0x408   :  { %v776_v0 = vadd.f32 1e-05, %v775_v8 }
 0x40a   :  { %1332 = vrsqrt.f32 %v776_v0  ;;  %vm783_vm12 = vweird.f32 %v776_v0 }
 0x410   :  { %v1333_v45 = vpop.eup %1332 }
 0x411   :  { %v778_v40 = vmul.f32 %v1333_v45, %v776_v0  ;;  %vm784_vm11 = vweird.f32 %v1333_v45 }
 0x412   :  { %vm785_vm13 = vmor %vm783_vm12, %vm784_vm11 }
 0x413   :  { %v779_v44 = vmul.f32 %v1333_v45, %v778_v40 }
 0x415   :  { %v780_v48 = vmul.f32 0.5, %v779_v44 }
 0x416   :  { %v1308_v50 = vpop.permute.xlu2 %1307 }
 0x417   :  { %v781_v54 = vsub.f32 1.5, %v780_v48  ;;  %v1309_v30 = vunpack.i.l.bf16 %v1308_v50  ;;  %v1310_v31 = vunpack.i.h.bf16 %v1308_v50 }
 0x419   :  { %v782_v10 = vmul.f32 %v1333_v45, %v781_v54  ;;  %v929_v12 = vsel %vm129_vm1, %v1340_v11, %v1309_v30  ;;  %v907_v56 = vsel %vm129_vm1, %v1309_v30, %v1310_v31  ;;  %v1113_v11 = vld [vmem:[%s2207_s12 + $0x78] sm:$0xff]  ;;  %v1106_v31 = vld [vmem:[%s2207_s12 + $0x40] sm:$0xff] }
 0x41a   :  { %998 = vmatmul.f32.vlgmr.msra.gmra.mxu1 %v929_v12  ;;  %1114 = vmatpush.msra.mxu3 %v1113_v11 }
 0x41b   :  { %v786_v14 = vsel %vm785_vm13, %v1333_v45, %v782_v10 }
 0x41c   :  { %v787_v15 = vmul.f32 %v786_v14, %v1961_v25  ;;  %v788_v16 = vmul.f32 %v786_v14, %v1967_v27  ;;  %v1112_v14 = vld [vmem:[%s2207_s12 + $0x70] sm:$0xff] }
 0x41d   :  { %1115 = vmatpush.msra.mxu3 %v1112_v14 }
 0x41e   :  { %v792_v21 = vmul.f32 %v1320_v13, %v787_v15  ;;  %v793_v22 = vmul.f32 %v1320_v13, %v788_v16  ;;  %v920_v52 = vpop.permute.xlu2 %919 }
 0x420   :  { %v797_v26 = vadd.f32 %v1321_v17, %v792_v21  ;;  %v798_v24 = vadd.f32 %v1321_v17, %v793_v22  ;;  %v1111_v17 = vld [vmem:[%s2207_s12 + $0x68] sm:$0xff]  ;;  %v1110_v21 = vld [vmem:[%s2207_s12 + $0x60] sm:$0xff] }
 0x421   :  { %1116 = vmatpush.msra.mxu3 %v1111_v17 }
 0x422   :  { %v799_v25 = vmax.f32 %v797_v26, 0.0  ;;  %v800_v27 = vmax.f32 %v798_v24, 0.0 }
 0x423   :  { %1117 = vmatpush.msra.mxu3 %v1110_v21 }
 0x424   :  { %835 = vmatmul.f32.vlgmr.msrb.gmra.mxu3 %v799_v25  ;;  %v802_v28 = vmul.f32 %v1959_v23, %v800_v27  ;;  %v1109_v25 = vld [vmem:[%s2207_s12 + $0x58] sm:$0xff]  ;;  %v1108_v27 = vld [vmem:[%s2207_s12 + $0x50] sm:$0xff] }
 0x425   :  { %1118 = vmatpush.msra.mxu3 %v1109_v25 }
 0x427   :  { %1119 = vmatpush.msra.mxu3 %v1108_v27 }
 0x42c   :  { %838 = vmatmul.f32.gmra.mxu3 %v802_v28 }
 0x436   :  { %v1313_v43 = vpop.permute.xlu1 %1312 }
 0x437   :  { %v1314_v29 = vunpack.i.l.bf16 %v1313_v43  ;;  %v1315_v59 = vunpack.i.h.bf16 %v1313_v43  ;;  %v1107_v43 = vld [vmem:[%s2207_s12 + $0x48] sm:$0xff] }
 0x438   :  { %1120 = vmatpush.msra.mxu3 %v1107_v43 }
 0x439   :  { %v930_v38 = vsel %vm129_vm1, %v1341_v37, %v1314_v29  ;;  %v908_v60 = vsel %vm129_vm1, %v1314_v29, %v1315_v59  ;;  %v1104_v59 = vld [vmem:[%s2207_s12 + $0x30] sm:$0xff] }
 0x43a   :  { %1001 = vmatmul.f32.gmra.mxu1 %v930_v38  ;;  %1121 = vmatpush.msra.mxu3 %v1106_v31 }
 0x43c   :  { %v918_v53 = vpop.permute.xlu0 %917 }
 0x43d   :  { %v925_v57 = vsel %vm185_vm2, %v918_v53, %v920_v52  ;;  %v931_v58 = vsel %vm185_vm2, %v907_v56, %v918_v53  ;;  %v1105_v53 = vld [vmem:[%s2207_s12 + $0x38] sm:$0xff] }
 0x43e   :  { %1021 = vmatmul.f32.vlgmr.msrb.gmra.mxu2 %v931_v58  ;;  %1277 = vmatmul.msk.f32.vlgmr.msra.gmra.mxu0 %vm977_vm14, %v925_v57  ;;  %v924_v49 = vpop.permute.xlu1 %923 }
 0x43f   :  { %1122 = vmatpush.msra.mxu3 %v1105_v53 }
 0x441   :  { %1123 = vmatpush.msra.mxu3 %v1104_v59 }
 0x444   :  { %v922_v55 = vpop.permute.xlu0 %921 }
 0x445   :  { %v932_v61 = vsel %vm185_vm2, %v908_v60, %v922_v55  ;;  %v926_v62 = vsel %vm185_vm2, %v922_v55, %v924_v49  ;;  %v1103_v60 = vld [vmem:[%s2207_s12 + $0x28] sm:$0xff] }
 0x446   :  { %1024 = vmatmul.f32.gmra.mxu2 %v932_v61  ;;  %1278 = vmatmul.msk.f32.gmra.mxu0 %vm977_vm14, %v926_v62 }
 0x447   :  { %1124 = vmatpush.msra.mxu3 %v1103_v60 }
 0x497   :  { %v999_v33 = vpop.f32.mrf.mxu1 }
 0x4a7   :  { %v836_v6 = vpop.f32.mrf.mxu3 }
 0x4af   :  { %v839_v7 = vpop.f32.mrf.mxu3 }
 0x4b0   :  { %v844_v8 = vadd.f32 %v839_v7, %v836_v6 }
 0x4b2   :  { %v845_v9 = vrot.slane %v844_v8, 4 }
 0x4b4   :  { %v846_v63 = vadd.f32 %v845_v9, %v844_v8  ;;  %v1101_v9 = vld [vmem:[%s2207_s12 + $0x18] sm:$0xff] }
 0x4b6   :  { %v847_v0 = vrot.slane %v846_v63, 2 }
 0x4b7   :  { %v1002_v47 = vpop.f32.mrf.mxu1 }
 0x4b8   :  { %v848_v1 = vadd.f32 %v847_v0, %v846_v63  ;;  %v1322_v0 = vld [vmem:[%s2214_s19] ss:$0 sm:$0xff] }
 0x4ba   :  { %v849_v2 = vrot.slane %v848_v1, 1 }
 0x4bb   :  { %v1045_v45 = vpop.f32.mrf.mxu0 }
 0x4bc   :  { %v850_v3 = vadd.f32 %v849_v2, %v848_v1  ;;  %v1100_v2 = vld [vmem:[%s2207_s12 + $0x10] sm:$0xff] }
 0x4be   :  { %v851_v32 = vmul.f32 0.083333336, %v850_v3  ;;  %v1099_v3 = vld [vmem:[%s2207_s12 + $0x8] sm:$0xff] }
 0x4c0   :  { %v2089_v34 = vsub.f32 %v836_v6, %v851_v32  ;;  %v853_v35 = vsub.f32 %v839_v7, %v851_v32  ;;  %v1102_v6 = vld [vmem:[%s2207_s12 + $0x20] sm:$0xff] }
 0x4c1   :  { %v1022_v36 = vpop.f32.mrf.mxu2  ;;  %1125 = vmatpush.msra.mxu3 %v1102_v6 }
 0x4c2   :  { %v2092_v39 = vmul.f32 %v1959_v23, %v853_v35  ;;  %v856_v40 = vmul.f32 %v2089_v34, %v2089_v34  ;;  %v1023_v46 = vadd.f32 %v1022_v36, %v999_v33 }
 0x4c3   :  { %v1048_v20 = vpop.f32.mrf.mxu0  ;;  %1126 = vmatpush.msra.mxu3 %v1101_v9 }
 0x4c4   :  { %v857_v41 = vmul.f32 %v2092_v39, %v2092_v39  ;;  %v1046_v30 = vadd.f32 %v1045_v45, %v1023_v46  ;;  %v1323_v45 = vld [vmem:[%s2215_s20] ss:$0 sm:$0xff] }
 0x4c5   :  { %1127 = vmatpush.msra.mxu3 %v1100_v2 }
 0x4c6   :  { %v858_v42 = vadd.f32 %v857_v41, %v856_v40  ;;  %v1098_v40 = vld [vmem:[%s2207_s12] sm:$0xff] }
 0x4c7   :  { %1128 = vmatpush.msra.mxu3 %v1099_v3  ;;  %v1326_v3 = vld [vmem:[%s2208_s13] ss:$0 sm:$0xff] }
 0x4c8   :  { %v859_v44 = vrot.slane %v858_v42, 4 }
 0x4c9   :  { %v1025_v48 = vpop.f32.mrf.mxu2  ;;  %1129 = vmatpush.msra.mxu3 %v1098_v40 }
 0x4ca   :  { %v860_v50 = vadd.f32 %v859_v44, %v858_v42  ;;  %v1026_v51 = vadd.f32 %v1025_v48, %v1002_v47 }
 0x4cc   :  { %v861_v54 = vrot.slane %v860_v50, 2  ;;  %v1049_v4 = vadd.f32 %v1048_v20, %v1026_v51 }
 0x4ce   :  { %v862_v5 = vadd.f32 %v861_v54, %v860_v50  ;;  %v1053_v10 = vadd.f32 %v1049_v4, %v1046_v30 }
 0x4d0   :  { %v863_v12 = vrot.slane %v862_v5, 1  ;;  %v1054_v13 = vrot.slane %v1053_v10, 4 }
 0x4d2   :  { %v864_v15 = vadd.f32 %v863_v12, %v862_v5  ;;  %v1055_v16 = vadd.f32 %v1054_v13, %v1053_v10  ;;  %v1324_v12 = vld [vmem:[%s2205_s10] ss:$0 sm:$0xff] }
 0x4d4   :  { %v865_v18 = vmul.f32 0.083333336, %v864_v15  ;;  %v1056_v19 = vrot.slane %v1055_v16, 2 }
 0x4d6   :  { %v866_v22 = vadd.f32 1e-05, %v865_v18  ;;  %v1057_v26 = vadd.f32 %v1056_v19, %v1055_v16 }
 0x4d8   :  { %1334 = vrsqrt.f32 %v866_v22  ;;  %v1058_v24 = vrot.slane %v1057_v26, 1  ;;  %vm873_vm0 = vweird.f32 %v866_v22 }
 0x4da   :  { %v1059_v28 = vadd.f32 %v1058_v24, %v1057_v26 }
 0x4dc   :  { %v1060_v29 = vmul.f32 0.0625, %v1059_v28 }
 0x4de   :  { %v1335_v37 = vpop.eup %1334  ;;  %v2122_v38 = vsub.f32 %v1046_v30, %v1060_v29  ;;  %v2124_v52 = vsub.f32 %v1049_v4, %v1060_v29 }
 0x4df   :  { %v868_v56 = vmul.f32 %v1335_v37, %v866_v22  ;;  %vm874_vm15 = vweird.f32 %v1335_v37 }
 0x4e0   :  { %v1063_v57 = vmul.f32 %v2122_v38, %v2122_v38  ;;  %v1064_v58 = vmul.f32 %v2124_v52, %v2124_v52  ;;  %vm875_vm1 = vmor %vm873_vm0, %vm874_vm15 }
 0x4e1   :  { %v869_v49 = vmul.f32 %v1335_v37, %v868_v56 }
 0x4e2   :  { %v1065_v55 = vadd.f32 %v1064_v58, %v1063_v57 }
 0x4e3   :  { %v870_v61 = vmul.f32 0.5, %v869_v49 }
 0x4e4   :  { %v1066_v62 = vrot.slane %v1065_v55, 4 }
 0x4e5   :  { %v871_v7 = vsub.f32 1.5, %v870_v61 }
 0x4e6   :  { %v1067_v8 = vadd.f32 %v1066_v62, %v1065_v55 }
 0x4e7   :  { %v872_v63 = vmul.f32 %v1335_v37, %v871_v7 }
 0x4e8   :  { %v1068_v1 = vrot.slane %v1067_v8, 2 }
 0x4e9   :  { %v876_v32 = vsel %vm875_vm1, %v1335_v37, %v872_v63 }
 0x4ea   :  { %v877_v33 = vmul.f32 %v876_v32, %v2089_v34  ;;  %v878_v35 = vmul.f32 %v876_v32, %v2092_v39  ;;  %v1069_v36 = vadd.f32 %v1068_v1, %v1067_v8 }
 0x4ec   :  { %v882_v41 = vmul.f32 %v1322_v0, %v877_v33  ;;  %v883_v42 = vmul.f32 %v1322_v0, %v878_v35  ;;  %v1070_v44 = vrot.slane %v1069_v36, 1 }
 0x4ee   :  { %v887_v46 = vadd.f32 %v1323_v45, %v882_v41  ;;  %v888_v47 = vadd.f32 %v1323_v45, %v883_v42  ;;  %v1071_v48 = vadd.f32 %v1070_v44, %v1069_v36  ;;  %v1327_v45 = vld [vmem:[%s2209_s14] ss:$0 sm:$0xff] }
 0x4f0   :  { %v890_v34 = vmax.f32 %v888_v47, 0.0  ;;  %v1072_v50 = vmul.f32 0.0625, %v1071_v48  ;;  %v889_v39 = vmax.f32 %v887_v46, 0.0 }
 0x4f2   :  { %v1073_v51 = vadd.f32 1e-05, %v1072_v50  ;;  %v892_v20 = vmul.f32 %v1959_v23, %v890_v34  ;;  %893 = vst [vmem:[#allocation6] sm:$0xff] %v889_v39  ;;  %v1325_v23 = vld [vmem:[%s2206_s11] ss:$0 sm:$0xff]  ;;  %s1423_s11 = smov 8  }
 0x4f3   :  { %1211 = dma.vmem_to_hbm [thread:$0]  %s1204_s6, 256, %s1206_s16, [#allocation5], %s1422_s17, %s1422_s17, %s1423_s11  }
 0x4f4   :  { %1336 = vrsqrt.f32 %v1073_v51  ;;  %894 = vst [vmem:[#allocation6 + $0x8] sm:$0xff] %v892_v20  ;;  %vm1080_vm3 = vweird.f32 %v1073_v51 }
 0x4f5   :  { %1224 = dma.vmem_to_hbm [thread:$0]  %s1217_s24, 256, %s1219_s30, [#allocation5], %s1422_s17, %s1422_s17, %s1423_s11  }
 0x4fa   :  { %v1337_v54 = vpop.eup %1336 }
 0x4fb   :  { %v1075_v30 = vmul.f32 %v1337_v54, %v1073_v51  ;;  %vm1081_vm2 = vweird.f32 %v1337_v54 }
 0x4fc   :  { %vm1082_vm4 = vmor %vm1080_vm3, %vm1081_vm2 }
 0x4fd   :  { %v1076_v4 = vmul.f32 %v1337_v54, %v1075_v30 }
 0x4ff   :  { %v1077_v5 = vmul.f32 0.5, %v1076_v4 }
 0x501   :  { %v1078_v10 = vsub.f32 1.5, %v1077_v5 }
 0x503   :  { %v1079_v11 = vmul.f32 %v1337_v54, %v1078_v10 }
 0x505   :  { %v1083_v13 = vsel %vm1082_vm4, %v1337_v54, %v1079_v11 }
 0x506   :  { %v1084_v14 = vmul.f32 %v1083_v13, %v2122_v38  ;;  %v1085_v15 = vmul.f32 %v1083_v13, %v2124_v52 }
 0x508   :  { %v1089_v16 = vmul.f32 %v1324_v12, %v1084_v14  ;;  %v1090_v19 = vmul.f32 %v1324_v12, %v1085_v15 }
 0x50a   :  { %v1094_v17 = vadd.f32 %v1325_v23, %v1089_v16  ;;  %v1095_v21 = vadd.f32 %v1325_v23, %v1090_v19 }
 0x50c   :  { %v1096_v18 = vmax.f32 %v1094_v17, 0.0  ;;  %v1097_v22 = vmax.f32 %v1095_v21, 0.0 }
 0x50e   :  { %1130 = vmatmul.f32.vlgmr.msra.gmra.mxu3 %v1096_v18 }
 0x516   :  { %1133 = vmatmul.f32.gmra.mxu3 %v1097_v22 }
 0x591   :  { %v1131_v26 = vpop.f32.mrf.mxu3 }
 0x599   :  { %v1134_v25 = vpop.f32.mrf.mxu3 }
 0x59a   :  { %v1139_v24 = vadd.f32 %v1134_v25, %v1131_v26 }
 0x59c   :  { %v1140_v27 = vrot.slane %v1139_v24, 4 }
 0x59e   :  { %v1141_v28 = vadd.f32 %v1140_v27, %v1139_v24 }
 0x5a0   :  { %v1142_v43 = vrot.slane %v1141_v28, 2 }
 0x5a2   :  { %v1143_v29 = vadd.f32 %v1142_v43, %v1141_v28 }
 0x5a4   :  { %v1144_v31 = vrot.slane %v1143_v29, 1 }
 0x5a6   :  { %v1145_v37 = vadd.f32 %v1144_v31, %v1143_v29 }
 0x5a8   :  { %v1146_v38 = vmul.f32 0.0625, %v1145_v37 }
 0x5aa   :  { %v1147_v52 = vsub.f32 %v1131_v26, %v1146_v38  ;;  %v1148_v53 = vsub.f32 %v1134_v25, %v1146_v38 }
 0x5ac   :  { %v1149_v56 = vmul.f32 %v1147_v52, %v1147_v52  ;;  %v1150_v57 = vmul.f32 %v1148_v53, %v1148_v53 }
 0x5ae   :  { %v1151_v58 = vadd.f32 %v1150_v57, %v1149_v56 }
 0x5b0   :  { %v1152_v59 = vrot.slane %v1151_v58, 4 }
 0x5b2   :  { %v1153_v49 = vadd.f32 %v1152_v59, %v1151_v58 }
 0x5b4   :  { %v1154_v55 = vrot.slane %v1153_v49, 2 }
 0x5b6   :  { %v1155_v60 = vadd.f32 %v1154_v55, %v1153_v49 }
 0x5b8   :  { %v1156_v61 = vrot.slane %v1155_v60, 1 }
 0x5ba   :  { %v1157_v62 = vadd.f32 %v1156_v61, %v1155_v60 }
 0x5bc   :  { %v1158_v6 = vmul.f32 0.0625, %v1157_v62 }
 0x5be   :  { %v1159_v7 = vadd.f32 1e-05, %v1158_v6 }
 0x5c0   :  { %1338 = vrsqrt.f32 %v1159_v7  ;;  %vm1166_vm6 = vweird.f32 %v1159_v7 }
 0x5c6   :  { %v1339_v8 = vpop.eup %1338 }
 0x5c7   :  { %v1161_v9 = vmul.f32 %v1339_v8, %v1159_v7  ;;  %vm1167_vm5 = vweird.f32 %v1339_v8 }
 0x5c8   :  { %vm1168_vm7 = vmor %vm1166_vm6, %vm1167_vm5 }
 0x5c9   :  { %v1162_v63 = vmul.f32 %v1339_v8, %v1161_v9 }
 0x5cb   :  { %v1163_v0 = vmul.f32 0.5, %v1162_v63 }
 0x5cd   :  { %v1164_v1 = vsub.f32 1.5, %v1163_v0 }
 0x5cf   :  { %v1165_v2 = vmul.f32 %v1339_v8, %v1164_v1 }
 0x5d1   :  { %v1169_v32 = vsel %vm1168_vm7, %v1339_v8, %v1165_v2 }
 0x5d2   :  { %v1170_v33 = vmul.f32 %v1169_v32, %v1147_v52  ;;  %v1171_v35 = vmul.f32 %v1169_v32, %v1148_v53 }
 0x5d4   :  { %v1175_v36 = vmul.f32 %v1326_v3, %v1170_v33  ;;  %v1176_v40 = vmul.f32 %v1326_v3, %v1171_v35 }
 0x5d6   :  { %v1180_v41 = vadd.f32 %v1327_v45, %v1175_v36  ;;  %v1181_v42 = vadd.f32 %v1327_v45, %v1176_v40 }
 0x5d8   :  { %v1183_v44 = vmax.f32 %v1181_v42, 0.0  ;;  %v1182_v46 = vmax.f32 %v1180_v41, 0.0 }
 0x5da   :  { %1185 = vst [vmem:[#allocation2 + $0x8] sm:$0xff] %v1183_v44 }
 0x5db   :  { %1184 = vst [vmem:[#allocation2] sm:$0xff] %v1182_v46 }
 0x5dc   :  { %1198 = dma.vmem_to_hbm [thread:$0]  %s1191_s7, 256, %s1193_s0, [#allocation3], %s1422_s17, %s1422_s17, %s1423_s11  }
 0x5dd   :  { %1414 = dma.done.wait [#allocation3], 256  }
 0x5de   :  { %1415 = vsyncadd [#allocation3], 4294967040 }
 0x5df   :  { %1416 = dma.done.wait [#allocation5], 512  }
 0x5e0   :  { %1417 = vsyncadd [#allocation5], 4294966784 }
 0x5e1   :  { %1237 = vsyncpa [#allocation3], 1 }
 0x5e2   :  { %1238 = vsyncpa [#allocation5], 1 }

</bundles_post_ra>
